<compile_context>
chip_gen: v7x
topology: tpu7x:2x2x1
jax: 0.10.0
libtpu: 0.0.40
codegen_flags: <defaults>
</compile_context>

<pallas_src>
import functools

import jax
import jax.numpy as jnp
from jax.experimental import pallas as pl
from jax.experimental.pallas import tpu as pltpu

_EPS = 1e-5
_MXU_DTYPE = jnp.bfloat16            # MXU is bf16-native on v5e/v6e/v7x
_VMEM_LIMIT = 48 * 1024 * 1024       # explicit scoped-VMEM cap (safe on v7x's 64 MiB)


def _row_tile(m, target):
    """Row tile: full array if small, else `target` (multiple of 8) with cdiv grid."""
    return m if m <= target else target


def _pick_row_block(h, w):
    """Largest divisor of h whose (rows x cols) block stays ~<= 4096 pixels."""
    target_pixels = 4096
    th = 1
    for cand in range(1, h + 1):
        if h % cand == 0 and cand * w <= target_pixels:
            th = cand
    return th


# ---------------- kernel 1: tiled matmul + bias (ConvTranspose lowers to this) -----
def _matmul_bias_kernel(a_ref, w_ref, b_ref, o_ref):
    a = a_ref[...].astype(_MXU_DTYPE)            # bf16 operands, f32 accumulation
    o_ref[...] = (
        jnp.dot(a, w_ref[...], preferred_element_type=jnp.float32) + b_ref[...]
    )


def matmul_bias(a, w_bf16, b):
    m, k = a.shape
    n = w_bf16.shape[1]
    tm = _row_tile(m, 512)
    return pl.pallas_call(
        _matmul_bias_kernel,
        out_shape=jax.ShapeDtypeStruct((m, n), jnp.float32),
        grid=(pl.cdiv(m, tm),),
        in_specs=[
            pl.BlockSpec((tm, k), lambda i: (i, 0)),
            pl.BlockSpec((k, n), lambda i: (0, 0)),
            pl.BlockSpec((1, n), lambda i: (0, 0)),
        ],
        out_specs=pl.BlockSpec((tm, n), lambda i: (i, 0)),
        compiler_params=pltpu.CompilerParams(
            dimension_semantics=("parallel",),
            vmem_limit_bytes=_VMEM_LIMIT,
        ),
    )(a, w_bf16, b.reshape(1, n).astype(jnp.float32))


# ---------------- kernel 2: fused 3x3 conv + bias + BN partial stats ---------------
def _conv3x3_stats_kernel(x_ref, w_ref, b_ref, y_ref, s_ref, q_ref, *,
                          th, w_out, cin, cout):
    # x_ref: (1, 1, th+2, w_out+2, cin) halo row-block of one image
    # w_ref: (9, cin, cout) bf16 taps;  b_ref: (1, cout) f32
    # y_ref: (1, 1, th, w_out, cout) conv+bias output
    # s_ref/q_ref: (1, 1, cout) per-image partial sum / sum-of-squares
    @pl.when(pl.program_id(1) == 0)
    def _():
        s_ref[...] = jnp.zeros_like(s_ref)
        q_ref[...] = jnp.zeros_like(q_ref)

    x = x_ref[...].reshape(th + 2, w_out + 2, cin).astype(_MXU_DTYPE)

    acc = None
    for t in range(9):                              # 9 shifted matmuls (no im2col)
        di, dj = t // 3, t % 3
        a = x[di:di + th, dj:dj + w_out, :].reshape(th * w_out, cin)
        p = jnp.dot(a, w_ref[t], preferred_element_type=jnp.float32)
        acc = p if acc is None else acc + p

    y = acc + b_ref[...]                            # (th*w_out, cout) f32
    s_ref[...] += jnp.sum(y, axis=0, keepdims=True)[None]
    q_ref[...] += jnp.sum(y * y, axis=0, keepdims=True)[None]
    y_ref[...] = y.reshape(1, 1, th, w_out, cout)


# ---------------- kernel 3: BatchNorm (gamma=1, beta=0) + GELU, lane-dense ---------
def _bn_gelu_kernel(x_ref, mean_ref, inv_ref, o_ref):
    xn = (x_ref[...] - mean_ref[...]) * inv_ref[...]
    # tanh-approx GELU: one EUP tanh instead of the rational-erf VALU chain.
    c0 = 0.7978845608028654
    c1 = 0.044715
    o_ref[...] = 0.5 * xn * (1.0 + jnp.tanh(c0 * (xn + c1 * xn * xn * xn)))


def bn_gelu(x, mean, inv_std):
    m, c = x.shape
    if c < 128 and 128 % c == 0 and (m * c) % 128 == 0:
        # Pack to a lane-dense (R, 128) slab; channel = lane % c, so stats tile.
        reps = 128 // c
        xr = x.reshape(m * c // 128, 128)
        mean_r = jnp.tile(mean, (1, reps))
        inv_r = jnp.tile(inv_std, (1, reps))
    else:
        xr, mean_r, inv_r = x, mean, inv_std
    r, cc = xr.shape
    tr = _row_tile(r, 1024)
    out = pl.pallas_call(
        _bn_gelu_kernel,
        out_shape=jax.ShapeDtypeStruct((r, cc), jnp.float32),
        grid=(pl.cdiv(r, tr),),
        in_specs=[
            pl.BlockSpec((tr, cc), lambda i: (i, 0)),
            pl.BlockSpec((1, cc), lambda i: (0, 0)),
            pl.BlockSpec((1, cc), lambda i: (0, 0)),
        ],
        out_specs=pl.BlockSpec((tr, cc), lambda i: (i, 0)),
        compiler_params=pltpu.CompilerParams(
            dimension_semantics=("parallel",),
            vmem_limit_bytes=_VMEM_LIMIT,
        ),
    )(xr, mean_r, inv_r)
    return out.reshape(m, c)


# ---------------- glue: layers built on the kernels --------------------------------
def conv_transpose_2x2(x_nhwc, w, b):
    """nn.ConvTranspose2d(cin, cout, 2, 2); w: (Cin, Cout, 2, 2) PyTorch layout."""
    n, h, wd, cin = x_nhwc.shape
    cout = w.shape[1]
    a = x_nhwc.reshape(n * h * wd, cin)
    w_mat = jnp.transpose(w, (0, 2, 3, 1)).reshape(cin, 4 * cout).astype(_MXU_DTYPE)
    b_mat = jnp.tile(b, 4)
    y = matmul_bias(a, w_mat, b_mat)                 # (N*H*W, 4*Cout), cols = (di,dj,co)
    # TODO(synk): depth-to-space could be folded into the kernel's output index_map
    # (di as a grid axis) to avoid this XLA transpose of the upsampled tensor.
    y = y.reshape(n, h, wd, 2, 2, cout)
    y = jnp.transpose(y, (0, 1, 3, 2, 4, 5)).reshape(n, 2 * h, 2 * wd, cout)
    return y


def conv3x3_bn_gelu(x_nhwc, w, b):
    """nn.Conv2d(cin, cout, 3, 1, 1) + BN(train) + GELU; w: (Cout, Cin, 3, 3)."""
    n, h, wd, cin = x_nhwc.shape
    cout = w.shape[0]

    # 1-pixel spatial halo pad + row-block extraction (only copy of the activation).
    xp = jnp.pad(x_nhwc, ((0, 0), (1, 1), (1, 1), (0, 0)))
    th = _pick_row_block(h, wd)
    hb = h // th
    if hb == 1:
        xb = xp[:, None]                                         # (n,1,h+2,wd+2,cin)
    else:
        xb = jnp.stack([xp[:, i * th:i * th + th + 2] for i in range(hb)], axis=1)

    w_mat = jnp.transpose(w, (2, 3, 1, 0)).reshape(9, cin, cout).astype(_MXU_DTYPE)
    b_mat = b.reshape(1, cout).astype(jnp.float32)

    kernel = functools.partial(
        _conv3x3_stats_kernel, th=th, w_out=wd, cin=cin, cout=cout)

    y, s, q = pl.pallas_call(
        kernel,
        out_shape=(
            jax.ShapeDtypeStruct((n, hb, th, wd, cout), jnp.float32),
            jax.ShapeDtypeStruct((n, 1, cout), jnp.float32),
            jax.ShapeDtypeStruct((n, 1, cout), jnp.float32),
        ),
        grid=(n, hb),
        in_specs=[
            pl.BlockSpec((1, 1, th + 2, wd + 2, cin), lambda i, j: (i, j, 0, 0, 0)),
            pl.BlockSpec((9, cin, cout), lambda i, j: (0, 0, 0)),
            pl.BlockSpec((1, cout), lambda i, j: (0, 0)),
        ],
        out_specs=(
            pl.BlockSpec((1, 1, th, wd, cout), lambda i, j: (i, j, 0, 0, 0)),
            pl.BlockSpec((1, 1, cout), lambda i, j: (i, 0, 0)),   # accumulate over hb
            pl.BlockSpec((1, 1, cout), lambda i, j: (i, 0, 0)),
        ),
        compiler_params=pltpu.CompilerParams(
            dimension_semantics=("parallel", "arbitrary"),
            vmem_limit_bytes=_VMEM_LIMIT,
        ),
    )(xb, w_mat, b_mat)

    m = n * h * wd
    s_tot = jnp.sum(s, axis=0).reshape(1, cout)
    q_tot = jnp.sum(q, axis=0).reshape(1, cout)
    mean = s_tot / m
    # biased variance (training-mode BatchNorm).
    # TODO(synk): E[x^2]-E[x]^2 can cancel catastrophically for large offsets.
    var = q_tot / m - mean * mean
    inv_std = jax.lax.rsqrt(var + _EPS)

    y2d = y.reshape(m, cout)                 # free row-major reshape
    out = bn_gelu(y2d, mean, inv_std)
    return out.reshape(n, h, wd, cout)


def unet_up_forward(params, x_nchw, skip_nchw):
    x = jnp.concatenate([x_nchw, skip_nchw], axis=1)          # cat on channels (NCHW)
    x = jnp.transpose(x, (0, 2, 3, 1))                        # NCHW -> NHWC
    x = conv_transpose_2x2(x, params["ct_w"], params["ct_b"])
    for blk in ("blk1", "blk2"):                              # ResidualConvBlock, is_res=False
        p = params[blk]
        x = conv3x3_bn_gelu(x, p["w1"], p["b1"])
        x = conv3x3_bn_gelu(x, p["w2"], p["b2"])
    return jnp.transpose(x, (0, 3, 1, 2))                     # NHWC -> NCHW


# ---------------- deterministic parameter init --------------------------------------
def init_params(key, in_channels, out_channels):
    keys = jax.random.split(key, 10)

    def u(k, shape, fan_in):
        bound = 1.0 / (fan_in ** 0.5)
        return jax.random.uniform(k, shape, jnp.float32, -bound, bound)

    p = {
        "ct_w": u(keys[0], (in_channels, out_channels, 2, 2), in_channels * 4),
        "ct_b": u(keys[1], (out_channels,), in_channels * 4),
    }
    idx = 2
    for name in ("blk1", "blk2"):
        p[name] = {
            "w1": u(keys[idx + 0], (out_channels, out_channels, 3, 3), out_channels * 9),
            "b1": u(keys[idx + 1], (out_channels,), out_channels * 9),
            "w2": u(keys[idx + 2], (out_channels, out_channels, 3, 3), out_channels * 9),
            "b2": u(keys[idx + 3], (out_channels,), out_channels * 9),
        }
        idx += 4
    return p


# ---------------- pure-JAX reference (same bf16-matmul recipe, exact erf GELU) ------
def _ref_conv_bn_gelu(x, w, b):
    wt = jnp.transpose(w, (2, 3, 1, 0)).astype(_MXU_DTYPE)      # OIHW -> HWIO
    y = jax.lax.conv_general_dilated(
        x.astype(_MXU_DTYPE), wt, (1, 1), "SAME",
        dimension_numbers=("NHWC", "HWIO", "NHWC"),
        preferred_element_type=jnp.float32) + b
    mean = jnp.mean(y, axis=(0, 1, 2), keepdims=True)
    var = jnp.mean((y - mean) ** 2, axis=(0, 1, 2), keepdims=True)
    yn = (y - mean) * jax.lax.rsqrt(var + _EPS)
    return 0.5 * yn * (1.0 + jax.scipy.special.erf(yn / jnp.sqrt(2.0)))


def reference_forward(params, x_nchw, skip_nchw):
    x = jnp.concatenate([x_nchw, skip_nchw], axis=1)
    x = jnp.transpose(x, (0, 2, 3, 1))
    w, b = params["ct_w"], params["ct_b"]
    n, h, wd, _ = x.shape
    co = w.shape[1]
    y = jnp.einsum("nhwc,cdkl->nhwkld",
                   x.astype(_MXU_DTYPE), w.astype(_MXU_DTYPE),
                   preferred_element_type=jnp.float32) + b      # (N,H,W,2,2,Cout)
    x = jnp.transpose(y, (0, 1, 3, 2, 4, 5)).reshape(n, 2 * h, 2 * wd, co)
    for blk in ("blk1", "blk2"):
        p = params[blk]
        x = _ref_conv_bn_gelu(x, p["w1"], p["b1"])
        x = _ref_conv_bn_gelu(x, p["w2"], p["b2"])
    return jnp.transpose(x, (0, 3, 1, 2))


if __name__ == "__main__":
    key = jax.random.PRNGKey(0)
    kx, ks, kp = jax.random.split(key, 3)

    N, C, H, W = 2, 4, 8, 8          # x and skip each have 4 channels
    out_channels = 4
    in_channels = 2 * C              # after torch.cat((x, skip), 1)

    x = jax.random.normal(kx, (N, C, H, W), jnp.float32)
    skip = jax.random.normal(ks, (N, C, H, W), jnp.float32)
    params = init_params(kp, in_channels, out_channels)

    out = jax.jit(unet_up_forward)(params, x, skip)
    out = jax.block_until_ready(out)

    assert out.shape == (N, out_channels, 2 * H, 2 * W), out.shape
    ref = reference_forward(params, x, skip)
    # bf16 MXU operands + tanh-GELU vs exact-erf reference -> small tolerance headroom.
    max_err = float(jnp.max(jnp.abs(out - ref)))
    assert max_err < 3e-2, f"mismatch vs reference: {max_err}"

    print("KERNEL_OK")
</pallas_src>

<mosaic_0001>
module attributes {stable_mosaic.version = 11 : i64} {
  func.func @_matmul_bias_kernel(%arg0: i32, %arg1: memref<128x8xf32, #tpu.memory_space<vmem>>, %arg2: memref<8x16xbf16, #tpu.memory_space<vmem>>, %arg3: memref<1x16xf32, #tpu.memory_space<vmem>>, %arg4: memref<128x16xf32, #tpu.memory_space<vmem>>) attributes {dimension_semantics = [#tpu.dimension_semantics<parallel>], iteration_bounds = array<i64: 1>, scalar_prefetch = 0 : i64, scratch_operands = 0 : i64, tpu.core_type = #tpu.core_type<tc>, window_params = [{transform_indices = @transform_0, window_bounds = array<i64: 128, 8>}, {pipeline_mode = #tpu.pipeline_mode<synchronous>, transform_indices = @transform_1, window_bounds = array<i64: 8, 16>}, {pipeline_mode = #tpu.pipeline_mode<synchronous>, transform_indices = @transform_2, window_bounds = array<i64: 1, 16>}, {transform_indices = @transform_3, window_bounds = array<i64: 128, 16>}]} {
    %c0 = arith.constant 0 : index
    %c0_0 = arith.constant 0 : index
    %0 = vector.load %arg1[%c0, %c0_0] : memref<128x8xf32, #tpu.memory_space<vmem>>, vector<128x8xf32>
    %1 = arith.truncf %0 : vector<128x8xf32> to vector<128x8xbf16>
    %c0_1 = arith.constant 0 : index
    %c0_2 = arith.constant 0 : index
    %2 = vector.load %arg2[%c0_1, %c0_2] : memref<8x16xbf16, #tpu.memory_space<vmem>>, vector<8x16xbf16>
    %cst = arith.constant dense<0.000000e+00> : vector<128x16xf32>
    %3 = tpu.matmul %1, %2, %cst {dimension_numbers = #tpu.dot_dimension_numbers<[1], [0], [0], [1], [0, 0, 1, 1], [], []>} : vector<128x8xbf16>, vector<8x16xbf16>, vector<128x16xf32> -> vector<128x16xf32>
    %c0_3 = arith.constant 0 : index
    %c0_4 = arith.constant 0 : index
    %4 = vector.load %arg3[%c0_3, %c0_4] : memref<1x16xf32, #tpu.memory_space<vmem>>, vector<1x16xf32>
    %5 = vector.broadcast %4 : vector<1x16xf32> to vector<128x16xf32>
    %6 = arith.addf %3, %5 : vector<128x16xf32>
    %c0_5 = arith.constant 0 : index
    %c0_6 = arith.constant 0 : index
    %7 = vector.load %arg4[%c0_5, %c0_6] : memref<128x16xf32, #tpu.memory_space<vmem>>, vector<128x16xf32>
    tpu.vector_store %arg4[%c0_5, %c0_6], %6 {strides = array<i32>} : memref<128x16xf32, #tpu.memory_space<vmem>>, vector<128x16xf32>,
    return
  }
  func.func @transform_0(%arg0: i32) -> (i32, i32) {
    %c0_i32 = arith.constant 0 : i32
    %c0_i32_0 = arith.constant 0 : i32
    return %arg0, %c0_i32 : i32, i32
  }
  func.func @transform_1(%arg0: i32) -> (i32, i32) {
    %c0_i32 = arith.constant 0 : i32
    %c0_i32_0 = arith.constant 0 : i32
    %c0_i32_1 = arith.constant 0 : i32
    return %c0_i32, %c0_i32_0 : i32, i32
  }
  func.func @transform_2(%arg0: i32) -> (i32, i32) {
    %c0_i32 = arith.constant 0 : i32
    %c0_i32_0 = arith.constant 0 : i32
    %c0_i32_1 = arith.constant 0 : i32
    return %c0_i32, %c0_i32_0 : i32, i32
  }
  func.func @transform_3(%arg0: i32) -> (i32, i32) {
    %c0_i32 = arith.constant 0 : i32
    %c0_i32_0 = arith.constant 0 : i32
    return %arg0, %c0_i32 : i32, i32
  }
}

module attributes {stable_mosaic.version = 11 : i64} {
  func.func @_conv3x3_stats_kernel(%arg0: i32, %arg1: i32, %arg2: memref<1x1x18x18x4xf32, #tpu.memory_space<vmem>>, %arg3: memref<9x4x4xbf16, #tpu.memory_space<vmem>>, %arg4: memref<1x4xf32, #tpu.memory_space<vmem>>, %arg5: memref<1x1x16x16x4xf32, #tpu.memory_space<vmem>>, %arg6: memref<1x1x4xf32, #tpu.memory_space<vmem>>, %arg7: memref<1x1x4xf32, #tpu.memory_space<vmem>>) attributes {dimension_semantics = [#tpu.dimension_semantics<parallel>, #tpu.dimension_semantics<arbitrary>], iteration_bounds = array<i64: 2, 1>, scalar_prefetch = 0 : i64, scratch_operands = 0 : i64, tpu.core_type = #tpu.core_type<tc>, window_params = [{transform_indices = @transform_0, window_bounds = array<i64: 1, 1, 18, 18, 4>}, {pipeline_mode = #tpu.pipeline_mode<synchronous>, transform_indices = @transform_1, window_bounds = array<i64: 9, 4, 4>}, {pipeline_mode = #tpu.pipeline_mode<synchronous>, transform_indices = @transform_2, window_bounds = array<i64: 1, 4>}, {transform_indices = @transform_3, window_bounds = array<i64: 1, 1, 16, 16, 4>}, {transform_indices = @transform_4, window_bounds = array<i64: 1, 1, 4>}, {transform_indices = @transform_5, window_bounds = array<i64: 1, 1, 4>}]} {
    %c0_i32 = arith.constant 0 : i32
    %0 = arith.cmpi eq, %arg1, %c0_i32 : i32
    %1 = arith.extui %0 : i1 to i32
    %c0_i32_0 = arith.constant 0 : i32
    %2 = arith.cmpi ne, %1, %c0_i32_0 : i32
    scf.if %2 {
      %cst_53 = arith.constant 0.000000e+00 : f32
      %77 = vector.broadcast %cst_53 : f32 to vector<1x1x4xf32>
      %c0_54 = arith.constant 0 : index
      %c0_55 = arith.constant 0 : index
      %c0_56 = arith.constant 0 : index
      %78 = vector.load %arg6[%c0_54, %c0_55, %c0_56] : memref<1x1x4xf32, #tpu.memory_space<vmem>>, vector<1x1x4xf32>
      tpu.vector_store %arg6[%c0_54, %c0_55, %c0_56], %77 {strides = array<i32>} : memref<1x1x4xf32, #tpu.memory_space<vmem>>, vector<1x1x4xf32>,
      %cst_57 = arith.constant 0.000000e+00 : f32
      %79 = vector.broadcast %cst_57 : f32 to vector<1x1x4xf32>
      %c0_58 = arith.constant 0 : index
      %c0_59 = arith.constant 0 : index
      %c0_60 = arith.constant 0 : index
      %80 = vector.load %arg7[%c0_58, %c0_59, %c0_60] : memref<1x1x4xf32, #tpu.memory_space<vmem>>, vector<1x1x4xf32>
      tpu.vector_store %arg7[%c0_58, %c0_59, %c0_60], %79 {strides = array<i32>} : memref<1x1x4xf32, #tpu.memory_space<vmem>>, vector<1x1x4xf32>,
    } else {
    }
    %c0 = arith.constant 0 : index
    %c0_1 = arith.constant 0 : index
    %c0_2 = arith.constant 0 : index
    %c0_3 = arith.constant 0 : index
    %c0_4 = arith.constant 0 : index
    %3 = vector.load %arg2[%c0, %c0_1, %c0_2, %c0_3, %c0_4] : memref<1x1x18x18x4xf32, #tpu.memory_space<vmem>>, vector<1x1x18x18x4xf32>
    %4 = vector.shape_cast %3 : vector<1x1x18x18x4xf32> to vector<18x18x4xf32>
    %5 = arith.truncf %4 : vector<18x18x4xf32> to vector<18x18x4xbf16>
    %6 = vector.extract_strided_slice %5 {offsets = [0, 0, 0], sizes = [16, 16, 4], strides = [1, 1, 1]} : vector<18x18x4xbf16> to vector<16x16x4xbf16>
    %7 = vector.shape_cast %6 : vector<16x16x4xbf16> to vector<256x4xbf16>
    %c0_5 = arith.constant 0 : index
    %c0_6 = arith.constant 0 : index
    %c0_7 = arith.constant 0 : index
    %8 = vector.load %arg3[%c0_5, %c0_6, %c0_7] : memref<9x4x4xbf16, #tpu.memory_space<vmem>>, vector<1x4x4xbf16>
    %9 = vector.shape_cast %8 : vector<1x4x4xbf16> to vector<4x4xbf16>
    %cst = arith.constant dense<0.000000e+00> : vector<256x4xf32>
    %10 = tpu.matmul %7, %9, %cst {dimension_numbers = #tpu.dot_dimension_numbers<[1], [0], [0], [1], [0, 0, 1, 1], [], []>} : vector<256x4xbf16>, vector<4x4xbf16>, vector<256x4xf32> -> vector<256x4xf32>
    %11 = vector.extract_strided_slice %5 {offsets = [0, 1, 0], sizes = [16, 16, 4], strides = [1, 1, 1]} : vector<18x18x4xbf16> to vector<16x16x4xbf16>
    %12 = vector.shape_cast %11 : vector<16x16x4xbf16> to vector<256x4xbf16>
    %c1 = arith.constant 1 : index
    %c0_8 = arith.constant 0 : index
    %c0_9 = arith.constant 0 : index
    %13 = vector.load %arg3[%c1, %c0_8, %c0_9] : memref<9x4x4xbf16, #tpu.memory_space<vmem>>, vector<1x4x4xbf16>
    %14 = vector.shape_cast %13 : vector<1x4x4xbf16> to vector<4x4xbf16>
    %cst_10 = arith.constant dense<0.000000e+00> : vector<256x4xf32>
    %15 = tpu.matmul %12, %14, %cst_10 {dimension_numbers = #tpu.dot_dimension_numbers<[1], [0], [0], [1], [0, 0, 1, 1], [], []>} : vector<256x4xbf16>, vector<4x4xbf16>, vector<256x4xf32> -> vector<256x4xf32>
    %16 = arith.addf %10, %15 : vector<256x4xf32>
    %17 = vector.extract_strided_slice %5 {offsets = [0, 2, 0], sizes = [16, 16, 4], strides = [1, 1, 1]} : vector<18x18x4xbf16> to vector<16x16x4xbf16>
    %18 = vector.shape_cast %17 : vector<16x16x4xbf16> to vector<256x4xbf16>
    %c2 = arith.constant 2 : index
    %c0_11 = arith.constant 0 : index
    %c0_12 = arith.constant 0 : index
    %19 = vector.load %arg3[%c2, %c0_11, %c0_12] : memref<9x4x4xbf16, #tpu.memory_space<vmem>>, vector<1x4x4xbf16>
    %20 = vector.shape_cast %19 : vector<1x4x4xbf16> to vector<4x4xbf16>
    %cst_13 = arith.constant dense<0.000000e+00> : vector<256x4xf32>
    %21 = tpu.matmul %18, %20, %cst_13 {dimension_numbers = #tpu.dot_dimension_numbers<[1], [0], [0], [1], [0, 0, 1, 1], [], []>} : vector<256x4xbf16>, vector<4x4xbf16>, vector<256x4xf32> -> vector<256x4xf32>
    %22 = arith.addf %16, %21 : vector<256x4xf32>
    %23 = vector.extract_strided_slice %5 {offsets = [1, 0, 0], sizes = [16, 16, 4], strides = [1, 1, 1]} : vector<18x18x4xbf16> to vector<16x16x4xbf16>
    %24 = vector.shape_cast %23 : vector<16x16x4xbf16> to vector<256x4xbf16>
    %c3 = arith.constant 3 : index
    %c0_14 = arith.constant 0 : index
    %c0_15 = arith.constant 0 : index
    %25 = vector.load %arg3[%c3, %c0_14, %c0_15] : memref<9x4x4xbf16, #tpu.memory_space<vmem>>, vector<1x4x4xbf16>
    %26 = vector.shape_cast %25 : vector<1x4x4xbf16> to vector<4x4xbf16>
    %cst_16 = arith.constant dense<0.000000e+00> : vector<256x4xf32>
    %27 = tpu.matmul %24, %26, %cst_16 {dimension_numbers = #tpu.dot_dimension_numbers<[1], [0], [0], [1], [0, 0, 1, 1], [], []>} : vector<256x4xbf16>, vector<4x4xbf16>, vector<256x4xf32> -> vector<256x4xf32>
    %28 = arith.addf %22, %27 : vector<256x4xf32>
    %29 = vector.extract_strided_slice %5 {offsets = [1, 1, 0], sizes = [16, 16, 4], strides = [1, 1, 1]} : vector<18x18x4xbf16> to vector<16x16x4xbf16>
    %30 = vector.shape_cast %29 : vector<16x16x4xbf16> to vector<256x4xbf16>
    %c4 = arith.constant 4 : index
    %c0_17 = arith.constant 0 : index
    %c0_18 = arith.constant 0 : index
    %31 = vector.load %arg3[%c4, %c0_17, %c0_18] : memref<9x4x4xbf16, #tpu.memory_space<vmem>>, vector<1x4x4xbf16>
    %32 = vector.shape_cast %31 : vector<1x4x4xbf16> to vector<4x4xbf16>
    %cst_19 = arith.constant dense<0.000000e+00> : vector<256x4xf32>
    %33 = tpu.matmul %30, %32, %cst_19 {dimension_numbers = #tpu.dot_dimension_numbers<[1], [0], [0], [1], [0, 0, 1, 1], [], []>} : vector<256x4xbf16>, vector<4x4xbf16>, vector<256x4xf32> -> vector<256x4xf32>
    %34 = arith.addf %28, %33 : vector<256x4xf32>
    %35 = vector.extract_strided_slice %5 {offsets = [1, 2, 0], sizes = [16, 16, 4], strides = [1, 1, 1]} : vector<18x18x4xbf16> to vector<16x16x4xbf16>
    %36 = vector.shape_cast %35 : vector<16x16x4xbf16> to vector<256x4xbf16>
    %c5 = arith.constant 5 : index
    %c0_20 = arith.constant 0 : index
    %c0_21 = arith.constant 0 : index
    %37 = vector.load %arg3[%c5, %c0_20, %c0_21] : memref<9x4x4xbf16, #tpu.memory_space<vmem>>, vector<1x4x4xbf16>
    %38 = vector.shape_cast %37 : vector<1x4x4xbf16> to vector<4x4xbf16>
    %cst_22 = arith.constant dense<0.000000e+00> : vector<256x4xf32>
    %39 = tpu.matmul %36, %38, %cst_22 {dimension_numbers = #tpu.dot_dimension_numbers<[1], [0], [0], [1], [0, 0, 1, 1], [], []>} : vector<256x4xbf16>, vector<4x4xbf16>, vector<256x4xf32> -> vector<256x4xf32>
    %40 = arith.addf %34, %39 : vector<256x4xf32>
    %41 = vector.extract_strided_slice %5 {offsets = [2, 0, 0], sizes = [16, 16, 4], strides = [1, 1, 1]} : vector<18x18x4xbf16> to vector<16x16x4xbf16>
    %42 = vector.shape_cast %41 : vector<16x16x4xbf16> to vector<256x4xbf16>
    %c6 = arith.constant 6 : index
    %c0_23 = arith.constant 0 : index
    %c0_24 = arith.constant 0 : index
    %43 = vector.load %arg3[%c6, %c0_23, %c0_24] : memref<9x4x4xbf16, #tpu.memory_space<vmem>>, vector<1x4x4xbf16>
    %44 = vector.shape_cast %43 : vector<1x4x4xbf16> to vector<4x4xbf16>
    %cst_25 = arith.constant dense<0.000000e+00> : vector<256x4xf32>
    %45 = tpu.matmul %42, %44, %cst_25 {dimension_numbers = #tpu.dot_dimension_numbers<[1], [0], [0], [1], [0, 0, 1, 1], [], []>} : vector<256x4xbf16>, vector<4x4xbf16>, vector<256x4xf32> -> vector<256x4xf32>
    %46 = arith.addf %40, %45 : vector<256x4xf32>
    %47 = vector.extract_strided_slice %5 {offsets = [2, 1, 0], sizes = [16, 16, 4], strides = [1, 1, 1]} : vector<18x18x4xbf16> to vector<16x16x4xbf16>
    %48 = vector.shape_cast %47 : vector<16x16x4xbf16> to vector<256x4xbf16>
    %c7 = arith.constant 7 : index
    %c0_26 = arith.constant 0 : index
    %c0_27 = arith.constant 0 : index
    %49 = vector.load %arg3[%c7, %c0_26, %c0_27] : memref<9x4x4xbf16, #tpu.memory_space<vmem>>, vector<1x4x4xbf16>
    %50 = vector.shape_cast %49 : vector<1x4x4xbf16> to vector<4x4xbf16>
    %cst_28 = arith.constant dense<0.000000e+00> : vector<256x4xf32>
    %51 = tpu.matmul %48, %50, %cst_28 {dimension_numbers = #tpu.dot_dimension_numbers<[1], [0], [0], [1], [0, 0, 1, 1], [], []>} : vector<256x4xbf16>, vector<4x4xbf16>, vector<256x4xf32> -> vector<256x4xf32>
    %52 = arith.addf %46, %51 : vector<256x4xf32>
    %53 = vector.extract_strided_slice %5 {offsets = [2, 2, 0], sizes = [16, 16, 4], strides = [1, 1, 1]} : vector<18x18x4xbf16> to vector<16x16x4xbf16>
    %54 = vector.shape_cast %53 : vector<16x16x4xbf16> to vector<256x4xbf16>
    %c8 = arith.constant 8 : index
    %c0_29 = arith.constant 0 : index
    %c0_30 = arith.constant 0 : index
    %55 = vector.load %arg3[%c8, %c0_29, %c0_30] : memref<9x4x4xbf16, #tpu.memory_space<vmem>>, vector<1x4x4xbf16>
    %56 = vector.shape_cast %55 : vector<1x4x4xbf16> to vector<4x4xbf16>
    %cst_31 = arith.constant dense<0.000000e+00> : vector<256x4xf32>
    %57 = tpu.matmul %54, %56, %cst_31 {dimension_numbers = #tpu.dot_dimension_numbers<[1], [0], [0], [1], [0, 0, 1, 1], [], []>} : vector<256x4xbf16>, vector<4x4xbf16>, vector<256x4xf32> -> vector<256x4xf32>
    %58 = arith.addf %52, %57 : vector<256x4xf32>
    %c0_32 = arith.constant 0 : index
    %c0_33 = arith.constant 0 : index
    %59 = vector.load %arg4[%c0_32, %c0_33] : memref<1x4xf32, #tpu.memory_space<vmem>>, vector<1x4xf32>
    %60 = vector.broadcast %59 : vector<1x4xf32> to vector<256x4xf32>
    %61 = arith.addf %58, %60 : vector<256x4xf32>
    %c0_34 = arith.constant 0 : index
    %c0_35 = arith.constant 0 : index
    %c0_36 = arith.constant 0 : index
    %62 = vector.load %arg6[%c0_34, %c0_35, %c0_36] : memref<1x1x4xf32, #tpu.memory_space<vmem>>, vector<1x1x4xf32>
    %cst_37 = arith.constant dense<0.000000e+00> : vector<4xf32>
    %63 = vector.multi_reduction <add>, %61, %cst_37 [0] : vector<256x4xf32> to vector<4xf32>
    %64 = vector.shape_cast %63 : vector<4xf32> to vector<1x4xf32>
    %65 = vector.shape_cast %64 : vector<1x4xf32> to vector<1x1x4xf32>
    %66 = arith.addf %62, %65 : vector<1x1x4xf32>
    %c0_38 = arith.constant 0 : index
    %c0_39 = arith.constant 0 : index
    %c0_40 = arith.constant 0 : index
    %67 = vector.load %arg6[%c0_38, %c0_39, %c0_40] : memref<1x1x4xf32, #tpu.memory_space<vmem>>, vector<1x1x4xf32>
    tpu.vector_store %arg6[%c0_38, %c0_39, %c0_40], %66 {strides = array<i32>} : memref<1x1x4xf32, #tpu.memory_space<vmem>>, vector<1x1x4xf32>,
    %c0_41 = arith.constant 0 : index
    %c0_42 = arith.constant 0 : index
    %c0_43 = arith.constant 0 : index
    %68 = vector.load %arg7[%c0_41, %c0_42, %c0_43] : memref<1x1x4xf32, #tpu.memory_space<vmem>>, vector<1x1x4xf32>
    %69 = arith.mulf %61, %61 : vector<256x4xf32>
    %cst_44 = arith.constant dense<0.000000e+00> : vector<4xf32>
    %70 = vector.multi_reduction <add>, %69, %cst_44 [0] : vector<256x4xf32> to vector<4xf32>
    %71 = vector.shape_cast %70 : vector<4xf32> to vector<1x4xf32>
    %72 = vector.shape_cast %71 : vector<1x4xf32> to vector<1x1x4xf32>
    %73 = arith.addf %68, %72 : vector<1x1x4xf32>
    %c0_45 = arith.constant 0 : index
    %c0_46 = arith.constant 0 : index
    %c0_47 = arith.constant 0 : index
    %74 = vector.load %arg7[%c0_45, %c0_46, %c0_47] : memref<1x1x4xf32, #tpu.memory_space<vmem>>, vector<1x1x4xf32>
    tpu.vector_store %arg7[%c0_45, %c0_46, %c0_47], %73 {strides = array<i32>} : memref<1x1x4xf32, #tpu.memory_space<vmem>>, vector<1x1x4xf32>,
    %75 = vector.shape_cast %61 : vector<256x4xf32> to vector<1x1x16x16x4xf32>
    %c0_48 = arith.constant 0 : index
    %c0_49 = arith.constant 0 : index
    %c0_50 = arith.constant 0 : index
    %c0_51 = arith.constant 0 : index
    %c0_52 = arith.constant 0 : index
    %76 = vector.load %arg5[%c0_48, %c0_49, %c0_50, %c0_51, %c0_52] : memref<1x1x16x16x4xf32, #tpu.memory_space<vmem>>, vector<1x1x16x16x4xf32>
    tpu.vector_store %arg5[%c0_48, %c0_49, %c0_50, %c0_51, %c0_52], %75 {strides = array<i32>} : memref<1x1x16x16x4xf32, #tpu.memory_space<vmem>>, vector<1x1x16x16x4xf32>,
    return
  }
  func.func @transform_0(%arg0: i32, %arg1: i32) -> (i32, i32, i32, i32, i32) {
    %c0_i32 = arith.constant 0 : i32
    %c0_i32_0 = arith.constant 0 : i32
    %c0_i32_1 = arith.constant 0 : i32
    %c0_i32_2 = arith.constant 0 : i32
    return %arg0, %arg1, %c0_i32, %c0_i32_0, %c0_i32_1 : i32, i32, i32, i32, i32
  }
  func.func @transform_1(%arg0: i32, %arg1: i32) -> (i32, i32, i32) {
    %c0_i32 = arith.constant 0 : i32
    %c0_i32_0 = arith.constant 0 : i32
    %c0_i32_1 = arith.constant 0 : i32
    %c0_i32_2 = arith.constant 0 : i32
    return %c0_i32, %c0_i32_0, %c0_i32_1 : i32, i32, i32
  }
  func.func @transform_2(%arg0: i32, %arg1: i32) -> (i32, i32) {
    %c0_i32 = arith.constant 0 : i32
    %c0_i32_0 = arith.constant 0 : i32
    %c0_i32_1 = arith.constant 0 : i32
    return %c0_i32, %c0_i32_0 : i32, i32
  }
  func.func @transform_3(%arg0: i32, %arg1: i32) -> (i32, i32, i32, i32, i32) {
    %c0_i32 = arith.constant 0 : i32
    %c0_i32_0 = arith.constant 0 : i32
    %c0_i32_1 = arith.constant 0 : i32
    %c0_i32_2 = arith.constant 0 : i32
    return %arg0, %arg1, %c0_i32, %c0_i32_0, %c0_i32_1 : i32, i32, i32, i32, i32
  }
  func.func @transform_4(%arg0: i32, %arg1: i32) -> (i32, i32, i32) {
    %c0_i32 = arith.constant 0 : i32
    %c0_i32_0 = arith.constant 0 : i32
    %c0_i32_1 = arith.constant 0 : i32
    return %arg0, %c0_i32, %c0_i32_0 : i32, i32, i32
  }
  func.func @transform_5(%arg0: i32, %arg1: i32) -> (i32, i32, i32) {
    %c0_i32 = arith.constant 0 : i32
    %c0_i32_0 = arith.constant 0 : i32
    %c0_i32_1 = arith.constant 0 : i32
    return %arg0, %c0_i32, %c0_i32_0 : i32, i32, i32
  }
}

module attributes {stable_mosaic.version = 11 : i64} {
  func.func @_bn_gelu_kernel(%arg0: i32, %arg1: memref<16x128xf32, #tpu.memory_space<vmem>>, %arg2: memref<1x128xf32, #tpu.memory_space<vmem>>, %arg3: memref<1x128xf32, #tpu.memory_space<vmem>>, %arg4: memref<16x128xf32, #tpu.memory_space<vmem>>) attributes {dimension_semantics = [#tpu.dimension_semantics<parallel>], iteration_bounds = array<i64: 1>, scalar_prefetch = 0 : i64, scratch_operands = 0 : i64, tpu.core_type = #tpu.core_type<tc>, window_params = [{transform_indices = @transform_0, window_bounds = array<i64: 16, 128>}, {pipeline_mode = #tpu.pipeline_mode<synchronous>, transform_indices = @transform_1, window_bounds = array<i64: 1, 128>}, {pipeline_mode = #tpu.pipeline_mode<synchronous>, transform_indices = @transform_2, window_bounds = array<i64: 1, 128>}, {transform_indices = @transform_3, window_bounds = array<i64: 16, 128>}]} {
    %c0 = arith.constant 0 : index
    %c0_0 = arith.constant 0 : index
    %0 = vector.load %arg1[%c0, %c0_0] : memref<16x128xf32, #tpu.memory_space<vmem>>, vector<16x128xf32>
    %c0_1 = arith.constant 0 : index
    %c0_2 = arith.constant 0 : index
    %1 = vector.load %arg2[%c0_1, %c0_2] : memref<1x128xf32, #tpu.memory_space<vmem>>, vector<1x128xf32>
    %2 = vector.broadcast %1 : vector<1x128xf32> to vector<16x128xf32>
    %3 = arith.subf %0, %2 : vector<16x128xf32>
    %c0_3 = arith.constant 0 : index
    %c0_4 = arith.constant 0 : index
    %4 = vector.load %arg3[%c0_3, %c0_4] : memref<1x128xf32, #tpu.memory_space<vmem>>, vector<1x128xf32>
    %5 = vector.broadcast %4 : vector<1x128xf32> to vector<16x128xf32>
    %6 = arith.mulf %3, %5 : vector<16x128xf32>
    %cst = arith.constant 5.000000e-01 : f32
    %7 = vector.broadcast %cst : f32 to vector<16x128xf32>
    %8 = arith.mulf %7, %6 : vector<16x128xf32>
    %cst_5 = arith.constant 4.471500e-02 : f32
    %9 = vector.broadcast %cst_5 : f32 to vector<16x128xf32>
    %10 = arith.mulf %9, %6 : vector<16x128xf32>
    %11 = arith.mulf %10, %6 : vector<16x128xf32>
    %12 = arith.mulf %11, %6 : vector<16x128xf32>
    %13 = arith.addf %6, %12 : vector<16x128xf32>
    %cst_6 = arith.constant 0.797884583 : f32
    %14 = vector.broadcast %cst_6 : f32 to vector<16x128xf32>
    %15 = arith.mulf %14, %13 : vector<16x128xf32>
    %16 = math.tanh %15 : vector<16x128xf32>
    %cst_7 = arith.constant 1.000000e+00 : f32
    %17 = vector.broadcast %cst_7 : f32 to vector<16x128xf32>
    %18 = arith.addf %17, %16 : vector<16x128xf32>
    %19 = arith.mulf %8, %18 : vector<16x128xf32>
    %c0_8 = arith.constant 0 : index
    %c0_9 = arith.constant 0 : index
    %20 = vector.load %arg4[%c0_8, %c0_9] : memref<16x128xf32, #tpu.memory_space<vmem>>, vector<16x128xf32>
    tpu.vector_store %arg4[%c0_8, %c0_9], %19 {strides = array<i32>} : memref<16x128xf32, #tpu.memory_space<vmem>>, vector<16x128xf32>,
    return
  }
  func.func @transform_0(%arg0: i32) -> (i32, i32) {
    %c0_i32 = arith.constant 0 : i32
    %c0_i32_0 = arith.constant 0 : i32
    return %arg0, %c0_i32 : i32, i32
  }
  func.func @transform_1(%arg0: i32) -> (i32, i32) {
    %c0_i32 = arith.constant 0 : i32
    %c0_i32_0 = arith.constant 0 : i32
    %c0_i32_1 = arith.constant 0 : i32
    return %c0_i32, %c0_i32_0 : i32, i32
  }
  func.func @transform_2(%arg0: i32) -> (i32, i32) {
    %c0_i32 = arith.constant 0 : i32
    %c0_i32_0 = arith.constant 0 : i32
    %c0_i32_1 = arith.constant 0 : i32
    return %c0_i32, %c0_i32_0 : i32, i32
  }
  func.func @transform_3(%arg0: i32) -> (i32, i32) {
    %c0_i32 = arith.constant 0 : i32
    %c0_i32_0 = arith.constant 0 : i32
    return %arg0, %c0_i32 : i32, i32
  }
}

</mosaic_0001>

<bundles_post_ra>
// kernel: tile.48
= control target key start
LH: loop header
LB: loop body
LE: loop exit
PB: predicated region body
PF: predicated region fallthrough
CT: control target
= control target key end

     0   :  { %s22_s0 = inlined_call_operand.vmem [shape: f32[4], index: 0, kind: input, shape index: {}]   ;;  %s23_s1 = inlined_call_operand.vmem [shape: f32[4,4], index: 1, kind: output, shape index: {}]  }
   0x1   :  { %v4_v0 = vld [vmem:[%s22_s0] ss:$0 sm:$0xff] }
   0x2   :  { %5 = vst [vmem:[%s23_s1] sm:$0xf] %v4_v0 }

// kernel: tile.49
= control target key start
LH: loop header
LB: loop body
LE: loop exit
PB: predicated region body
PF: predicated region fallthrough
CT: control target
= control target key end

     0   :  { %vm7_vm0 = vcmask 31744   ;;  %s37_s8 = smov 4   ;;  %s38_s9 = smov 8   ;;  %vm13_vm1 = vcmask 130144   ;;  %vm19_vm2 = vcmask 97344   ;;  %vm25_vm3 = vcmask 64544   ;;  %s55_s0 = inlined_call_operand.vmem [shape: f32[4,4], index: 0, kind: input, shape index: {}]   ;;  %s56_s1 = inlined_call_operand.vmem [shape: f32[1,16], index: 1, kind: output, shape index: {}]  }
   0x1   :  { %v4_v0 = vld [vmem:[%s55_s0] sm:$0xf]  ;;  %s36_s0 = smov 12  }
   0x2   :  { %5 = vst [vmem:[#allocation1] sm:$0xf] %v4_v0 }
   0x9   :  { %v10_v1 = vld [vmem:[#allocation1 + $0x3] sm:$0x1]   ;;  %v22_v2 = vld [vmem:[#allocation1 + $0x1] sm:$0x1]   ;;  %v6_v3 = vld [vmem:[#allocation1] sm:$0x1]  }
   0xa   :  { %11 = vrot.lane.b32.xlu0 %v10_v1, %s36_s0  ;;  %23 = vrot.lane.b32.xlu1 %v22_v2, %s37_s8  ;;  %v16_v4 = vld [vmem:[#allocation1 + $0x2] sm:$0x1]   ;;  %8 = vst.msk [vmem:[#allocation0] sm:$0x1] %vm7_vm0, %v6_v3  }
   0xe   :  { %17 = vrot.lane.b32.xlu0 %v16_v4, %s38_s9 }
  0x7c   :  { %v12_v5 = vpop.permute.xlu0 %11   ;;  %v24_v6 = vpop.permute.xlu1 %23  }
  0x7d   :  { %14 = vst.msk [vmem:[#allocation0] sm:$0x1] %vm13_vm1, %v12_v5  }
  0x80   :  { %v18_v7 = vpop.permute.xlu0 %17  }
  0x81   :  { %20 = vst.msk [vmem:[#allocation0] sm:$0x1] %vm19_vm2, %v18_v7  }
  0x82   :  { %26 = vst.msk [vmem:[#allocation0] sm:$0x1] %vm25_vm3, %v24_v6  }
  0x89   :  { %v30_v8 = vld [vmem:[#allocation0] sm:$0x1] }
  0x8a   :  { %32 = vst [vmem:[%s56_s1] sm:$0x1] %v30_v8 }

// kernel: unet_up_forward.9
= control target key start
LH: loop header
LB: loop body
LE: loop exit
PB: predicated region body
PF: predicated region fallthrough
CT: control target
= control target key end

     0   :  { %vm72_vm0 = vcmask 1043456   ;;  %vm47_vm1 = vcmask 64512   ;;  %vm173_vm2 = vcmask 130048   ;;  %s380_s1 = inlined_call_operand.vmem [shape: bf16[8,16], index: 1, kind: input, shape index: {}]   ;;  %s381_s0 = inlined_call_operand.vmem [shape: f32[128,8], index: 0, kind: input, shape index: {}]   ;;  %s382_s2 = inlined_call_operand.vmem [shape: f32[1,16], index: 2, kind: input, shape index: {}]   ;;  %s383_s3 = inlined_call_operand.vmem [shape: f32[128,16], index: 3, kind: output, shape index: {}]  }
   0x1   :  { %v39_v0 = vld [vmem:[%s380_s1] sm:$0xf]  ;;  %v16_v2 = vld [vmem:[%s381_s0 + $0x8] sm:$0xff]  ;;  %v17_v7 = vld [vmem:[%s381_s0 + $0x10] sm:$0xff] }
   0x2   :  { %v15_v1 = vld [vmem:[%s381_s0] sm:$0xff]  ;;  %232 = vmatprep.subr.msk.bf16.mxu0 %vm72_vm0, %v39_v0  ;;  %233 = vmatprep.subr.msk.bf16.mxu1 %vm72_vm0, %v39_v0  ;;  %v74_v3 = vsel %vm72_vm0, %v39_v0, 0  ;;  %v24_v6 = vld [vmem:[%s381_s0 + $0x48] sm:$0xff]  ;;  %v18_v9 = vld [vmem:[%s381_s0 + $0x18] sm:$0xff] }
   0x3   :  { %v31_v4 = vpack.c.bf16 %v16_v2, %v15_v1  ;;  %v23_v5 = vld [vmem:[%s381_s0 + $0x40] sm:$0xff]  ;;  %213 = vmatpush3.bf16.msra.mxu0 %v74_v3  ;;  %231 = vmatpush3.bf16.msra.mxu1 %v74_v3  ;;  %v25_v10 = vld [vmem:[%s381_s0 + $0x50] sm:$0xff]  ;;  %v26_v11 = vld [vmem:[%s381_s0 + $0x58] sm:$0xff]  ;;  %v32_v12 = vpack.c.bf16 %v18_v9, %v17_v7 }
   0x4   :  { %v35_v8 = vpack.c.bf16 %v24_v6, %v23_v5  ;;  %v36_v13 = vpack.c.bf16 %v26_v11, %v25_v10  ;;  %v19_v14 = vld [vmem:[%s381_s0 + $0x20] sm:$0xff]  ;;  %v20_v15 = vld [vmem:[%s381_s0 + $0x28] sm:$0xff]  ;;  %v21_v20 = vld [vmem:[%s381_s0 + $0x30] sm:$0xff] }
   0x5   :  { %214 = vmatprep.mubr.msk.bf16.mxu0 %vm47_vm1, %v31_v4  ;;  %v27_v16 = vld [vmem:[%s381_s0 + $0x60] sm:$0xff]  ;;  %v33_v17 = vpack.c.bf16 %v20_v15, %v19_v14  ;;  %v28_v18 = vld [vmem:[%s381_s0 + $0x68] sm:$0xff]  ;;  %v22_v21 = vld [vmem:[%s381_s0 + $0x38] sm:$0xff] }
   0x6   :  { %222 = vmatprep.mubr.msk.bf16.mxu1 %vm47_vm1, %v35_v8  ;;  %215 = vmatmul.mubr.msk.bf16.vlgmr.msra.gmra.mrb[0].mxu0 %vm47_vm1, %v32_v12  ;;  %v37_v19 = vpack.c.bf16 %v28_v18, %v27_v16  ;;  %v29_v22 = vld [vmem:[%s381_s0 + $0x70] sm:$0xff]  ;;  %v30_v23 = vld [vmem:[%s381_s0 + $0x78] sm:$0xff]  ;;  %v34_v24 = vpack.c.bf16 %v22_v21, %v21_v20  ;;  %v194_v26 = vld [vmem:[%s382_s2] ss:$0 sm:$0xff] }
   0x7   :  { %223 = vmatmul.mubr.msk.bf16.vlgmr.msra.gmra.mrb[0].mxu1 %vm47_vm1, %v36_v13  ;;  %218 = vmatprep.mubr.msk.bf16.mxu0 %vm47_vm1, %v33_v17  ;;  %v38_v25 = vpack.c.bf16 %v30_v23, %v29_v22 }
   0x8   :  { %226 = vmatprep.mubr.msk.bf16.mxu1 %vm47_vm1, %v37_v19 }
   0xe   :  { %219 = vmatmul.mubr.msk.bf16.gmra.mrb[4].mxu0 %vm47_vm1, %v34_v24 }
   0xf   :  { %227 = vmatmul.mubr.msk.bf16.gmra.mrb[4].mxu1 %vm47_vm1, %v38_v25 }
  0xd9   :  { %v216_v27 = vpop.f32.mrb[0].mxu0 }
  0xda   :  { %v224_v28 = vpop.f32.mrb[0].mxu1  ;;  %v119_v29 = vadd.f32 %v216_v27, %v194_v26  ;;  %v110_v31 = vpop.f32.mrb[1].mxu0 }
  0xdb   :  { %v151_v30 = vadd.f32 %v224_v28, %v194_v26  ;;  %v142_v32 = vpop.f32.mrb[1].mxu1  ;;  %v111_v33 = vadd.f32 %v194_v26, %v110_v31  ;;  %v217_v35 = vpop.f32.mrb[2].mxu0 }
  0xdc   :  { %v143_v34 = vadd.f32 %v194_v26, %v142_v32  ;;  %v225_v36 = vpop.f32.mrb[2].mxu1  ;;  %176 = vst.msk [vmem:[%s383_s3 + $0x10] sm:$0xff] %vm173_vm2, %v119_v29  ;;  %v122_v37 = vadd.f32 %v217_v35, %v194_v26  ;;  %v113_v39 = vpop.f32.mrb[3].mxu0 }
  0xdd   :  { %184 = vst.msk [vmem:[%s383_s3 + $0x50] sm:$0xff] %vm173_vm2, %v151_v30  ;;  %v154_v38 = vadd.f32 %v225_v36, %v194_v26  ;;  %v145_v40 = vpop.f32.mrb[3].mxu1  ;;  %174 = vst.msk [vmem:[%s383_s3] sm:$0xff] %vm173_vm2, %v111_v33  ;;  %v114_v41 = vadd.f32 %v194_v26, %v113_v39 }
  0xde   :  { %182 = vst.msk [vmem:[%s383_s3 + $0x40] sm:$0xff] %vm173_vm2, %v143_v34  ;;  %v146_v42 = vadd.f32 %v194_v26, %v145_v40  ;;  %177 = vst.msk [vmem:[%s383_s3 + $0x18] sm:$0xff] %vm173_vm2, %v122_v37 }
  0xdf   :  { %185 = vst.msk [vmem:[%s383_s3 + $0x58] sm:$0xff] %vm173_vm2, %v154_v38  ;;  %175 = vst.msk [vmem:[%s383_s3 + $0x8] sm:$0xff] %vm173_vm2, %v114_v41 }
  0xe0   :  { %183 = vst.msk [vmem:[%s383_s3 + $0x48] sm:$0xff] %vm173_vm2, %v146_v42 }
  0xe1   :  { %v220_v43 = vpop.f32.mrb[4].mxu0 }
  0xe2   :  { %v228_v44 = vpop.f32.mrb[4].mxu1  ;;  %v135_v45 = vadd.f32 %v220_v43, %v194_v26  ;;  %v126_v47 = vpop.f32.mrb[5].mxu0 }
  0xe3   :  { %v167_v46 = vadd.f32 %v228_v44, %v194_v26  ;;  %v158_v48 = vpop.f32.mrb[5].mxu1  ;;  %v127_v49 = vadd.f32 %v194_v26, %v126_v47  ;;  %v221_v51 = vpop.f32.mrb[6].mxu0 }
  0xe4   :  { %v159_v50 = vadd.f32 %v194_v26, %v158_v48  ;;  %v229_v52 = vpop.f32.mrb[6].mxu1  ;;  %180 = vst.msk [vmem:[%s383_s3 + $0x30] sm:$0xff] %vm173_vm2, %v135_v45  ;;  %v138_v53 = vadd.f32 %v221_v51, %v194_v26  ;;  %v129_v55 = vpop.f32.mrb[7].mxu0 }
  0xe5   :  { %188 = vst.msk [vmem:[%s383_s3 + $0x70] sm:$0xff] %vm173_vm2, %v167_v46  ;;  %v170_v54 = vadd.f32 %v229_v52, %v194_v26  ;;  %v161_v56 = vpop.f32.mrb[7].mxu1  ;;  %178 = vst.msk [vmem:[%s383_s3 + $0x20] sm:$0xff] %vm173_vm2, %v127_v49  ;;  %v130_v57 = vadd.f32 %v194_v26, %v129_v55 }
  0xe6   :  { %186 = vst.msk [vmem:[%s383_s3 + $0x60] sm:$0xff] %vm173_vm2, %v159_v50  ;;  %v162_v58 = vadd.f32 %v194_v26, %v161_v56  ;;  %181 = vst.msk [vmem:[%s383_s3 + $0x38] sm:$0xff] %vm173_vm2, %v138_v53 }
  0xe7   :  { %189 = vst.msk [vmem:[%s383_s3 + $0x78] sm:$0xff] %vm173_vm2, %v170_v54  ;;  %179 = vst.msk [vmem:[%s383_s3 + $0x28] sm:$0xff] %vm173_vm2, %v130_v57 }
  0xe8   :  { %187 = vst.msk [vmem:[%s383_s3 + $0x68] sm:$0xff] %vm173_vm2, %v162_v58 }

// kernel: unet_up_forward.11
= control target key start
LH: loop header
LB: loop body
LE: loop exit
PB: predicated region body
PF: predicated region fallthrough
CT: control target
= control target key end

     0   :  { %s102_s0 = inlined_call_operand.vmem [shape: f32[16,128], index: 0, kind: input, shape index: {}]   ;;  %s103_s1 = inlined_call_operand.vmem [shape: f32[1,128], index: 1, kind: input, shape index: {}]   ;;  %s104_s2 = inlined_call_operand.vmem [shape: f32[1,128], index: 2, kind: input, shape index: {}]   ;;  %s105_s3 = inlined_call_operand.vmem [shape: f32[16,128], index: 3, kind: output, shape index: {}]  }
   0x1   :  { %v14_v0 = vld [vmem:[%s102_s0] sm:$0xff]  ;;  %v15_v4 = vld [vmem:[%s102_s0 + $0x8] sm:$0xff] }
   0x2   :  { %v58_v1 = vld [vmem:[%s103_s1] ss:$0 sm:$0xff] }
   0x3   :  { %v59_v2 = vld [vmem:[%s104_s2] ss:$0 sm:$0xff]  ;;  %v23_v3 = vsub.f32 %v14_v0, %v58_v1  ;;  %v24_v5 = vsub.f32 %v15_v4, %v58_v1 }
   0x5   :  { %v32_v6 = vmul.f32 %v59_v2, %v23_v3  ;;  %v33_v7 = vmul.f32 %v59_v2, %v24_v5 }
   0x7   :  { %v36_v8 = vmul.f32 0.044715, %v32_v6  ;;  %v37_v9 = vmul.f32 0.044715, %v33_v7  ;;  %v34_v18 = vmul.f32 0.5, %v32_v6  ;;  %v35_v20 = vmul.f32 0.5, %v33_v7 }
   0x9   :  { %v38_v10 = vmul.f32 %v36_v8, %v32_v6  ;;  %v39_v11 = vmul.f32 %v37_v9, %v33_v7 }
   0xb   :  { %v40_v12 = vmul.f32 %v38_v10, %v32_v6  ;;  %v41_v13 = vmul.f32 %v39_v11, %v33_v7 }
   0xd   :  { %v42_v14 = vadd.f32 %v40_v12, %v32_v6  ;;  %v43_v15 = vadd.f32 %v41_v13, %v33_v7 }
   0xf   :  { %v44_v16 = vmul.f32 0.7978846, %v42_v14  ;;  %v45_v17 = vmul.f32 0.7978846, %v43_v15 }
  0x11   :  { %60 = vtanh.f32 %v44_v16 }
  0x12   :  { %62 = vtanh.f32 %v45_v17 }
  0x1b   :  { %v61_v19 = vpop.eup %60 }
  0x1c   :  { %v63_v21 = vpop.eup %62  ;;  %v48_v22 = vadd.f32 1.0, %v61_v19 }
  0x1d   :  { %v49_v23 = vadd.f32 1.0, %v63_v21 }
  0x1e   :  { %v50_v24 = vmul.f32 %v48_v22, %v34_v18 }
  0x1f   :  { %v51_v25 = vmul.f32 %v49_v23, %v35_v20 }
  0x20   :  { %52 = vst [vmem:[%s105_s3] sm:$0xff] %v50_v24 }
  0x21   :  { %53 = vst [vmem:[%s105_s3 + $0x8] sm:$0xff] %v51_v25 }

// kernel: unet_up_forward.10
= control target key start
LH: loop header
LB: loop body
LE: loop exit
PB: predicated region body
PF: predicated region fallthrough
CT: control target
= control target key end

     0   :  { %s3909_s18 = smov 0   ;;  %s3911_s19 = smov 0   ;;  %s4816_s0 = inlined_call_operand.vmem [shape: f32[2,1,18,18,4], index: 0, kind: input, shape index: {}]   ;;  %s4817_s1 = inlined_call_operand.vmem [shape: bf16[9,4,4], index: 1, kind: input, shape index: {}]   ;;  %s4818_s2 = inlined_call_operand.vmem [shape: f32[1,4], index: 2, kind: input, shape index: {}]   ;;  %s4819_s3 = inlined_call_operand.vmem [shape: f32[2,1,16,16,4], index: 3, kind: output, shape index: {0}]   ;;  %s4820_s4 = inlined_call_operand.vmem [shape: f32[2,1,4], index: 4, kind: output, shape index: {1}]   ;;  %s4821_s5 = inlined_call_operand.vmem [shape: f32[2,1,4], index: 5, kind: output, shape index: {2}]  }
   0x1   :  { %s3913_s20 = smov 0  }
   0x2 LB: > { %s28_s21 = sadd.s32 1, %s3872_s19  ;;  %p2941_p0 = scmp.ge.s32.totalorder %s3876_s20, 1  ;;  %s3876_s20 = sphi %s3913_s20, %s16_s20   ;;  %s3872_s19 = sphi %s3911_s19, %s4827_s19   ;;  %s3868_s18 = sphi %s3909_s18, %s4826_s18  }
   0x3   : > { %p30_p1 = scmp.ge.s32.totalorder %s28_s21, 2  ;;  %p212_p2 = scmp.lt.s32.totalorder %s3876_s20, 3 }
   0x5   : > { %s4829_s21 = smov (%p30_p1, %s28_s21), 0  ;;  %p213_p3 = pnand %p2941_p0, %p212_p2 }
   0x7   : > { %216 = sbr.rel (%p213_p3) target bundleno = 555 (0x22b), region = 32 }
   0xe   : > { %v2945_v0 = vld [vmem:[%s4817_s1 + $0x2] sm:$0x3]  ;;  %vm621_vm0 = vcmask 1041408   ;;  %v3933_v1 = vld [vmem:[%s4817_s1 + $0x8] sm:$0x3]  ;;  %p254_p4 = scmp.lt.s32.totalorder %s3868_s18, 1 }
   0xf   : > { %3818 = vmatprep.subr.msk.bf16.mxu1 %vm621_vm0, %v2945_v0  ;;  %3822 = vmatprep.subr.msk.bf16.mxu0 %vm621_vm0, %v3933_v1  ;;  %v623_v2 = vsel %vm621_vm0, %v2945_v0, 0  ;;  %v3941_v3 = vsel %vm621_vm0, %v3933_v1, 0  ;;  %v376_v4 = vld [vmem:[%s4817_s1] sm:$0x3]  ;;  %v3029_v5 = vld [vmem:[%s4817_s1 + $0xa] sm:$0x3] }
  0x10   : > { %3255 = vmatpush3.bf16.msra.mxu1 %v623_v2  ;;  %3391 = vmatpush3.bf16.msra.mxu0 %v3941_v3  ;;  %s4831_s18 = smov (!%p254_p4, %s3868_s18), 1  ;;  %vm377_vm1 = vsmask.f32 7424  ;;  %vm572_vm2 = vcmask 31744   ;;  %v819_v16 = vsel %vm621_vm0, %v376_v4, 0  ;;  %v1733_v41 = vsel %vm621_vm0, %v3029_v5, 0 }
  0x11   : > { %3819 = vmatprep.subr.msk.bf16.mxu1 %vm621_vm0, %v376_v4  ;;  %3824 = vmatprep.subr.msk.bf16.mxu0 %vm621_vm0, %v3029_v5  ;;  %s3828_s30 = smul.u32 432, %s4831_s18  ;;  %v4022_v63 = vld [vmem:[%s4817_s1 + $0xc] sm:$0x3]  ;;  %vm1014_vm3 = vcmask 1046528   ;;  %s4594_s25 = scalar_lea.vmem %s4820_s4, %s4831_s18  ;;  %vm283_vm4 = vcmask 24576  }
  0x12   : > { %s4600_s28 = scalar_lea.vmem %s4821_s5, %s4831_s18  ;;  %s3100_s29 = sshll.u32 %s4831_s18, 8 }
  0x13   : > { %s3958_s8 = scalar_lea.vmem %s4816_s0, %s3828_s30  ;;  %s4631_s9 = scalar_lea.vmem %s4819_s3, %s3100_s29 }
  0x14   : > { %v286_v6 = vld [vmem:[%s3958_s8] sm:$0xff]  ;;  %v287_v7 = vld [vmem:[%s3958_s8 + $0x8] sm:$0xff]  ;;  %v288_v8 = vld [vmem:[%s3958_s8 + $0x10] sm:$0x3] }
  0x15   : > { %v3963_v9 = vpack.c.bf16 %v287_v7, %v286_v6  ;;  %v3965_v10 = vpack.c.bf16 %v288_v8, %v288_v8  ;;  %v289_v11 = vld [vmem:[%s3958_s8 + $0x18] sm:$0xff]  ;;  %v290_v12 = vld [vmem:[%s3958_s8 + $0x20] sm:$0xff]  ;;  %v291_v13 = vld [vmem:[%s3958_s8 + $0x28] sm:$0x3] }
  0x16   : > { %v3970_v14 = vpack.c.bf16 %v290_v12, %v289_v11  ;;  %v3972_v15 = vpack.c.bf16 %v291_v13, %v291_v13  ;;  %v292_v17 = vld [vmem:[%s3958_s8 + $0x30] sm:$0xff]  ;;  %v293_v18 = vld [vmem:[%s3958_s8 + $0x38] sm:$0xff]  ;;  %v294_v19 = vld [vmem:[%s3958_s8 + $0x40] sm:$0x3] }
  0x17   : > { %v379_v20 = vshrl.u32 %v3963_v9, 16  ;;  %v381_v21 = vshll.u32 %v3963_v9, 16  ;;  %v386_v22 = vshll.u32 %v3965_v10, 16  ;;  %v3981_v23 = vpack.c.bf16 %v293_v18, %v292_v17  ;;  %v295_v24 = vld [vmem:[%s3958_s8 + $0x48] sm:$0xff]  ;;  %v296_v25 = vld [vmem:[%s3958_s8 + $0x50] sm:$0xff]  ;;  %v298_v26 = vld [vmem:[%s3958_s8 + $0x60] sm:$0xff] }
  0x18   : > { %v391_v27 = vshrl.u32 %v3970_v14, 16  ;;  %v393_v28 = vshll.u32 %v3970_v14, 16  ;;  %v398_v29 = vshll.u32 %v3972_v15, 16  ;;  %v3989_v30 = vpack.c.bf16 %v294_v19, %v294_v19  ;;  %v297_v31 = vld [vmem:[%s3958_s8 + $0x58] sm:$0x3]  ;;  %v299_v32 = vld [vmem:[%s3958_s8 + $0x68] sm:$0xff] }
  0x19   : > { %v383_v33 = vrot.slane %v381_v21, 1  ;;  %v388_v34 = vrot.slane %v386_v22, 1  ;;  %v403_v35 = vshrl.u32 %v3981_v23, 16  ;;  %v405_v36 = vshll.u32 %v3981_v23, 16  ;;  %v300_v37 = vld [vmem:[%s3958_s8 + $0x70] sm:$0x3] }
  0x1a   : > { %v395_v38 = vrot.slane %v393_v28, 1  ;;  %v400_v39 = vrot.slane %v398_v29, 1  ;;  %v410_v40 = vshll.u32 %v3989_v30, 16  ;;  %v3998_v44 = vpack.c.bf16 %v296_v25, %v295_v24  ;;  %v301_v50 = vld [vmem:[%s3958_s8 + $0x78] sm:$0xff]  ;;  %v302_v51 = vld [vmem:[%s3958_s8 + $0x80] sm:$0xff]  ;;  %v304_v57 = vld [vmem:[%s3958_s8 + $0x90] sm:$0xff] }
  0x1b   : > { %v384_v42 = vor.u32 %v383_v33, %v379_v20  ;;  %v407_v43 = vrot.slane %v405_v36, 1  ;;  %v4000_v45 = vpack.c.bf16 %v297_v31, %v297_v31  ;;  %v4002_v48 = vpack.c.bf16 %v299_v32, %v298_v26  ;;  %v303_v56 = vld [vmem:[%s3958_s8 + $0x88] sm:$0x3]  ;;  %v305_v58 = vld [vmem:[%s3958_s8 + $0x98] sm:$0xff]  ;;  %v306_v6 = vld [vmem:[%s3958_s8 + $0xa0] sm:$0x3] }
  0x1c   : > { %v396_v46 = vor.u32 %v395_v38, %v391_v27  ;;  %v412_v47 = vrot.slane %v410_v40, 1  ;;  %v4004_v49 = vpack.c.bf16 %v300_v37, %v300_v37  ;;  %v415_v54 = vshrl.u32 %v3998_v44, 16  ;;  %v4036_v7 = vld [vmem:[%s4817_s1 + $0x4] sm:$0x3]  ;;  %v307_v17 = vld [vmem:[%s3958_s8 + $0xa8] sm:$0xff]  ;;  %v308_v18 = vld [vmem:[%s3958_s8 + $0xb0] sm:$0xff] }
  0x1d   : > { %v389_v52 = vsel %vm377_vm1, %v384_v42, %v388_v34  ;;  %v408_v53 = vor.u32 %v407_v43, %v403_v35  ;;  %v417_v55 = vshll.u32 %v3998_v44, 16  ;;  %v422_v60 = vshll.u32 %v4000_v45, 16  ;;  %v309_v22 = vld [vmem:[%s3958_s8 + $0xb8] sm:$0x3]  ;;  %v310_v32 = vld [vmem:[%s3958_s8 + $0xc0] sm:$0xff]  ;;  %v311_v33 = vld [vmem:[%s3958_s8 + $0xc8] sm:$0xff] }
  0x1e   : > { %3256 = vmatprep.mubr.msk.bf16.mxu1 %vm572_vm2, %v389_v52  ;;  %v401_v59 = vsel %vm377_vm1, %v396_v46, %v400_v39  ;;  %v427_v61 = vshrl.u32 %v4002_v48, 16  ;;  %v429_v62 = vshll.u32 %v4002_v48, 16  ;;  %v434_v4 = vshll.u32 %v4004_v49, 16  ;;  %v312_v46 = vld [vmem:[%s3958_s8 + $0xd0] sm:$0x3]  ;;  %v313_v52 = vld [vmem:[%s3958_s8 + $0xd8] sm:$0xff] }
  0x1f   : > { %3392 = vmatprep.mubr.msk.bf16.mxu0 %vm572_vm2, %v401_v59  ;;  %3257 = vmatmul.mubr.msk.bf16.vlgmr.msra.gmra.mrb[0].mxu1 %vm572_vm2, %v401_v59  ;;  %v4027_v0 = vsel %vm377_vm1, %v408_v53, %v412_v47  ;;  %v419_v2 = vrot.slane %v417_v55, 1  ;;  %v4030_v5 = vpack.c.bf16 %v302_v51, %v301_v50  ;;  %v424_v8 = vrot.slane %v422_v60, 1  ;;  %v317_v59 = vld [vmem:[%s3958_s8 + $0xf8] sm:$0xff] }
  0x20   : > { %3289 = vmatpush3.bf16.msra.mxu1 %v819_v16  ;;  %3393 = vmatmul.mubr.msk.bf16.vlgmr.msra.gmra.mrb[0].mxu0 %vm572_vm2, %v4027_v0  ;;  %v431_v11 = vrot.slane %v429_v62, 1  ;;  %v4040_v12 = vpack.c.bf16 %v303_v56, %v303_v56  ;;  %v4042_v13 = vpack.c.bf16 %v305_v58, %v304_v57  ;;  %v436_v20 = vrot.slane %v434_v4, 1  ;;  %v314_v57 = vld [vmem:[%s3958_s8 + $0xe0] sm:$0xff]  ;;  %v316_v58 = vld [vmem:[%s3958_s8 + $0xf0] sm:$0xff]  ;;  %v315_v62 = vld [vmem:[%s3958_s8 + $0xe8] sm:$0x3] }
  0x21   : > { %3425 = vmatpush3.bf16.msra.mxu0 %v1733_v41  ;;  %3260 = vmatprep.mubr.msk.bf16.mxu1 %vm572_vm2, %v4027_v0  ;;  %v420_v19 = vor.u32 %v419_v2, %v415_v54  ;;  %v439_v16 = vshrl.u32 %v4030_v5, 16  ;;  %v441_v21 = vshll.u32 %v4030_v5, 16  ;;  %v4052_v26 = vpack.c.bf16 %v306_v6, %v306_v6 }
  0x22   : > { %v432_v24 = vor.u32 %v431_v11, %v427_v61  ;;  %v446_v25 = vshll.u32 %v4040_v12, 16  ;;  %3825 = vmatprep.subr.msk.bf16.mxu0 %vm621_vm0, %v4022_v63  ;;  %3820 = vmatprep.subr.msk.bf16.mxu1 %vm621_vm0, %v4036_v7  ;;  %v453_v29 = vshll.u32 %v4042_v13, 16  ;;  %v4062_v31 = vpack.c.bf16 %v308_v18, %v307_v17  ;;  %v318_v18 = vld [vmem:[%s3958_s8 + $0x100] sm:$0x3] }
  0x23   : > { %v4059_v27 = vsel %vm377_vm1, %v420_v19, %v424_v8  ;;  %v443_v28 = vrot.slane %v441_v21, 1  ;;  %v451_v36 = vshrl.u32 %v4042_v13, 16  ;;  %v4072_v37 = vpack.c.bf16 %v309_v22, %v309_v22 }
  0x24   : > { %3396 = vmatprep.mubr.msk.bf16.mxu0 %vm572_vm2, %v4059_v27  ;;  %v4069_v34 = vsel %vm377_vm1, %v432_v24, %v436_v20  ;;  %v448_v35 = vrot.slane %v446_v25, 1  ;;  %v455_v39 = vrot.slane %v453_v29, 1  ;;  %v458_v40 = vshll.u32 %v4052_v26, 16  ;;  %v319_v24 = vld [vmem:[%s3958_s8 + $0x108] sm:$0xff]  ;;  %v320_v25 = vld [vmem:[%s3958_s8 + $0x110] sm:$0xff] }
  0x25   : > { %v444_v38 = vor.u32 %v443_v28, %v439_v16  ;;  %v465_v41 = vshll.u32 %v4062_v31, 16  ;;  %v463_v42 = vshrl.u32 %v4062_v31, 16  ;;  %v470_v43 = vshll.u32 %v4072_v37, 16 }
  0x26   : > { %v4079_v47 = vpack.c.bf16 %v311_v33, %v310_v32  ;;  %v456_v53 = vor.u32 %v455_v39, %v451_v36  ;;  %v460_v54 = vrot.slane %v458_v40, 1  ;;  %v4093_v55 = vpack.c.bf16 %v312_v46, %v312_v46  ;;  %v323_v36 = vld [vmem:[%s3958_s8 + $0x128] sm:$0xff] }
  0x27   : > { %3261 = vmatmul.mubr.msk.bf16.gmra.mrb[4].mxu1 %vm572_vm2, %v4059_v27  ;;  %v4084_v50 = vsel %vm377_vm1, %v444_v38, %v448_v35  ;;  %v467_v51 = vrot.slane %v465_v41, 1  ;;  %v472_v61 = vrot.slane %v470_v43, 1  ;;  %v4100_v2 = vpack.c.bf16 %v314_v57, %v313_v52  ;;  %v322_v35 = vld [vmem:[%s3958_s8 + $0x120] sm:$0xff] }
  0x28   : > { %3397 = vmatmul.mubr.msk.bf16.gmra.mrb[4].mxu0 %vm572_vm2, %v4069_v34  ;;  %3264 = vmatprep.mubr.msk.bf16.mxu1 %vm572_vm2, %v4069_v34  ;;  %v477_v56 = vshll.u32 %v4079_v47, 16  ;;  %v4102_v4 = vpack.c.bf16 %v317_v59, %v316_v58  ;;  %v4105_v6 = vsel %vm377_vm1, %v456_v53, %v460_v54  ;;  %v475_v8 = vshrl.u32 %v4079_v47, 16  ;;  %v324_v54 = vld [vmem:[%s3958_s8 + $0x130] sm:$0x3] }
  0x29   : > { %3400 = vmatprep.mubr.msk.bf16.mxu0 %vm572_vm2, %v4084_v50  ;;  %v468_v60 = vor.u32 %v467_v51, %v463_v42  ;;  %v482_v17 = vshll.u32 %v4093_v55, 16  ;;  %v4115_v20 = vpack.c.bf16 %v315_v62, %v315_v62  ;;  %v489_v16 = vshll.u32 %v4100_v2, 16  ;;  %v321_v51 = vld [vmem:[%s3958_s8 + $0x118] sm:$0x3] }
  0x2a   : > { %v479_v11 = vrot.slane %v477_v56, 1  ;;  %v4122_v21 = vpack.c.bf16 %v318_v18, %v318_v18  ;;  %v501_v22 = vshll.u32 %v4102_v4, 16  ;;  %v1018_v32 = vrot.slane %v3970_v14, 1  ;;  %v326_v18 = vld [vmem:[%s3958_s8 + $0x140] sm:$0xff] }
  0x2b   : > { %v4111_v19 = vsel %vm377_vm1, %v468_v60, %v472_v61  ;;  %v484_v29 = vrot.slane %v482_v17, 1  ;;  %v1019_v33 = vrot.slane %v3972_v15, 1  ;;  %v487_v38 = vshrl.u32 %v4100_v2, 16  ;;  %v325_v17 = vld [vmem:[%s3958_s8 + $0x138] sm:$0xff] }
  0x2c   : > { %v480_v28 = vor.u32 %v479_v11, %v475_v8  ;;  %v494_v39 = vshll.u32 %v4115_v20, 16  ;;  %v4135_v40 = vpack.c.bf16 %v320_v25, %v319_v24  ;;  %v491_v41 = vrot.slane %v489_v16, 1  ;;  %v328_v24 = vld [vmem:[%s3958_s8 + $0x150] sm:$0xff]  ;;  %v329_v25 = vld [vmem:[%s3958_s8 + $0x158] sm:$0xff] }
  0x2d   : > { %v499_v42 = vshrl.u32 %v4102_v4, 16  ;;  %v503_v43 = vrot.slane %v501_v22, 1  ;;  %v506_v46 = vshll.u32 %v4122_v21, 16  ;;  %v4143_v15 = vpack.c.bf16 %v323_v36, %v322_v35 }
  0x2e   : > { %v4141_v52 = vsel %vm377_vm1, %v480_v28, %v484_v29  ;;  %v4146_v53 = vsel %vm1014_vm3, %v1018_v32, %v1019_v33  ;;  %v1022_v56 = vrot.slane %v3989_v30, 1  ;;  %v1021_v57 = vrot.slane %v3981_v23, 1 }
  0x2f   : > { %3265 = vmatmul.mubr.msk.bf16.gmra.mrb[8].mxu1 %vm572_vm2, %v4084_v50  ;;  %v4153_v58 = vpack.c.bf16 %v321_v51, %v321_v51  ;;  %v513_v59 = vshll.u32 %v4135_v40, 16  ;;  %v492_v60 = vor.u32 %v491_v41, %v487_v38  ;;  %v496_v61 = vrot.slane %v494_v39, 1 }
  0x30   : > { %3401 = vmatmul.mubr.msk.bf16.gmra.mrb[8].mxu0 %vm572_vm2, %v4105_v6  ;;  %3268 = vmatprep.mubr.msk.bf16.mxu1 %vm572_vm2, %v4105_v6  ;;  %v504_v30 = vor.u32 %v503_v43, %v499_v42  ;;  %v508_v62 = vrot.slane %v506_v46, 1  ;;  %v4162_v8 = vpack.c.bf16 %v324_v54, %v324_v54  ;;  %v525_v11 = vshll.u32 %v4143_v15, 16  ;;  %v327_v42 = vld [vmem:[%s3958_s8 + $0x148] sm:$0x3]  ;;  %v330_v54 = vld [vmem:[%s3958_s8 + $0x160] sm:$0x3] }
  0x31   : > { %3404 = vmatprep.mubr.msk.bf16.mxu0 %vm572_vm2, %v4111_v19  ;;  %v1024_v16 = vrot.slane %v3998_v44, 1  ;;  %v1025_v22 = vrot.slane %v4000_v45, 1  ;;  %v511_v28 = vshrl.u32 %v4135_v40, 16  ;;  %v515_v29 = vrot.slane %v513_v59, 1 }
  0x32   : > { %v518_v32 = vshll.u32 %v4153_v58, 16  ;;  %v4174_v33 = vsel %vm377_vm1, %v492_v60, %v496_v61  ;;  %v4177_v35 = vsel %vm1014_vm3, %v1021_v57, %v1022_v56  ;;  %v4180_v36 = vsel %vm377_vm1, %v504_v30, %v508_v62  ;;  %v4202_v61 = vld [vmem:[%s4817_s1 + $0xe] sm:$0x3] }
  0x33   : > { %v4182_v38 = vpack.c.bf16 %v326_v18, %v325_v17  ;;  %v523_v45 = vshrl.u32 %v4143_v15, 16  ;;  %v527_v39 = vrot.slane %v525_v11, 1  ;;  %v530_v41 = vshll.u32 %v4162_v8, 16  ;;  %v331_v18 = vld [vmem:[%s3958_s8 + $0x168] sm:$0xff] }
  0x34   : > { %v4187_v43 = vpack.c.bf16 %v329_v25, %v328_v24  ;;  %v1934_v46 = vsel %vm621_vm0, %v4022_v63, 0  ;;  %v4192_v51 = vsel %vm1014_vm3, %v1024_v16, %v1025_v22  ;;  %v516_v56 = vor.u32 %v515_v29, %v511_v28  ;;  %v332_v16 = vld [vmem:[%s3958_s8 + $0x170] sm:$0xff] }
  0x35   : > { %v520_v57 = vrot.slane %v518_v32, 1  ;;  %v1027_v59 = vrot.slane %v4002_v48, 1  ;;  %v1028_v60 = vrot.slane %v4004_v49, 1  ;;  %v4208_v63 = vpack.c.bf16 %v327_v42, %v327_v42 }
  0x36   : > { %v537_v30 = vshll.u32 %v4182_v38, 16  ;;  %v528_v49 = vor.u32 %v527_v39, %v523_v45  ;;  %v532_v62 = vrot.slane %v530_v41, 1  ;;  %v4213_v11 = vpack.c.bf16 %v330_v54, %v330_v54  ;;  %v333_v54 = vld [vmem:[%s3958_s8 + $0x178] sm:$0x3] }
  0x37   : > { %3269 = vmatmul.mubr.msk.bf16.gmra.mrb[12].mxu1 %vm572_vm2, %v4111_v19  ;;  %v549_v17 = vshll.u32 %v4187_v43, 16  ;;  %v1030_v22 = vrot.slane %v4030_v5, 1  ;;  %v1031_v24 = vrot.slane %v4040_v12, 1  ;;  %v4223_v25 = vsel %vm377_vm1, %v516_v56, %v520_v57 }
  0x38   : > { %3405 = vmatmul.mubr.msk.bf16.gmra.mrb[12].mxu0 %vm572_vm2, %v4141_v52  ;;  %3272 = vmatprep.mubr.msk.bf16.mxu1 %vm572_vm2, %v4141_v52  ;;  %v4226_v28 = vsel %vm1014_vm3, %v1027_v59, %v1028_v60  ;;  %v535_v29 = vshrl.u32 %v4182_v38, 16  ;;  %v539_v32 = vrot.slane %v537_v30, 1  ;;  %v542_v45 = vshll.u32 %v4208_v63, 16 }
  0x39   : > { %3426 = vmatprep.mubr.msk.bf16.mxu0 %vm572_vm2, %v4146_v53  ;;  %v4230_v39 = vpack.c.bf16 %v332_v16, %v331_v18  ;;  %v4233_v41 = vsel %vm377_vm1, %v528_v49, %v532_v62  ;;  %v547_v12 = vshrl.u32 %v4187_v43, 16  ;;  %v551_v42 = vrot.slane %v549_v17, 1 }
  0x3a   : > { %4824 = vst [vmem:[#allocation2_spill] sm:$0xff] %v4233_v41  ;;  %v4239_v56 = vsel %vm1014_vm3, %v1030_v22, %v1031_v24  ;;  %v540_v57 = vor.u32 %v539_v32, %v535_v29  ;;  %v544_v59 = vrot.slane %v542_v45, 1  ;;  %v4247_v60 = vpack.c.bf16 %v333_v54, %v333_v54 }
  0x3b   : > { %v561_v30 = vshll.u32 %v4230_v39, 16  ;;  %v1033_v49 = vrot.slane %v4042_v13, 1  ;;  %v1034_v62 = vrot.slane %v4052_v26, 1  ;;  %v552_v17 = vor.u32 %v551_v42, %v547_v12 }
  0x3c   : > { %v1036_v16 = vrot.slane %v4062_v31, 1  ;;  %v1037_v22 = vrot.slane %v4072_v37, 1  ;;  %v4257_v24 = vsel %vm377_vm1, %v540_v57, %v544_v59  ;;  %v559_v29 = vshrl.u32 %v4230_v39, 16 }
  0x3d   : > { %v563_v32 = vrot.slane %v561_v30, 1  ;;  %v566_v45 = vshll.u32 %v4247_v60, 16  ;;  %v4262_v54 = vsel %vm1014_vm3, %v1033_v49, %v1034_v62  ;;  %v1039_v42 = vrot.slane %v4079_v47, 1 }
  0x3e   : > { %v4268_v26 = vsel %vm1014_vm3, %v1036_v16, %v1037_v22  ;;  %v1042_v57 = vrot.slane %v4100_v2, 1  ;;  %v1043_v59 = vrot.slane %v4115_v20, 1  ;;  %v1046_v20 = vrot.slane %v4122_v21, 1  ;;  %v2995_v21 = vld [vmem:[%s4817_s1 + $0x6] sm:$0x3] }
  0x3f   : > { %3273 = vmatmul.mubr.msk.bf16.gmra.mrb[16].mxu1 %vm572_vm2, %v4174_v33  ;;  %v564_v37 = vor.u32 %v563_v32, %v559_v29  ;;  %v568_v12 = vrot.slane %v566_v45, 1  ;;  %v1114_v16 = vsel %vm621_vm0, %v4036_v7, 0  ;;  %v1051_v7 = vrot.slane %v4143_v15, 1 }
  0x40   : > { %3427 = vmatmul.mubr.msk.bf16.vlgmr.msra.gmra.mrb[0].mxu0 %vm572_vm2, %v4177_v35  ;;  %3276 = vmatprep.mubr.msk.bf16.mxu1 %vm572_vm2, %v4180_v36  ;;  %v4289_v62 = vsel %vm1014_vm3, %v1042_v57, %v1043_v59  ;;  %v1054_v32 = vrot.slane %v4182_v38, 1  ;;  %v1055_v45 = vrot.slane %v4208_v63, 1  ;;  %v1058_v63 = vrot.slane %v4213_v11, 1  ;;  %v334_v57 = vld [vmem:[%s3958_s8 + $0x180] sm:$0xff]  ;;  %v335_v59 = vld [vmem:[%s3958_s8 + $0x188] sm:$0xff] }
  0x41   : > { %3459 = vmatpush3.bf16.msra.mxu0 %v1934_v46  ;;  %3430 = vmatprep.mubr.msk.bf16.mxu0 %vm572_vm2, %v4192_v51  ;;  %v554_v46 = vshll.u32 %v4213_v11, 16  ;;  %v4283_v30 = vsel %vm377_vm1, %v564_v37, %v568_v12 }
  0x42   : > { %3826 = vmatprep.subr.msk.bf16.mxu0 %vm621_vm0, %v4202_v61  ;;  %v4331_v12 = vsel %vm1014_vm3, %v1054_v32, %v1055_v45  ;;  %v3080_v32 = vld [vmem:[%s4817_s1 + $0x10] sm:$0x3]  ;;  %v1016_v45 = vrot.slane %v3965_v10, 1 }
  0x43   : > { %v556_v18 = vrot.slane %v554_v46, 1  ;;  %v1040_v46 = vrot.slane %v4093_v55, 1  ;;  %v1045_v55 = vrot.slane %v4102_v4, 1 }
  0x45   : > { %v4286_v49 = vsel %vm1014_vm3, %v1039_v42, %v1040_v46  ;;  %v4306_v22 = vsel %vm1014_vm3, %v1045_v55, %v1046_v20  ;;  %v1060_v42 = vrot.slane %v4230_v39, 1  ;;  %v1061_v46 = vrot.slane %v4247_v60, 1  ;;  %v336_v55 = vld [vmem:[%s3958_s8 + $0x190] sm:$0x3] }
  0x47   : > { %3277 = vmatmul.mubr.msk.bf16.gmra.mrb[20].mxu1 %vm572_vm2, %v4223_v25 }
  0x48   : > { %3431 = vmatmul.mubr.msk.bf16.gmra.mrb[4].mxu0 %vm572_vm2, %v4226_v28  ;;  %3280 = vmatprep.mubr.msk.bf16.mxu1 %vm572_vm2, %v4233_v41  ;;  %v4265_v41 = vsel %vm377_vm1, %v552_v17, %v556_v18  ;;  %v1048_v17 = vrot.slane %v4135_v40, 1  ;;  %v1049_v18 = vrot.slane %v4153_v58, 1  ;;  %v1052_v58 = vrot.slane %v4162_v8, 1 }
  0x49   : > { %3434 = vmatprep.mubr.msk.bf16.mxu0 %vm572_vm2, %v4239_v56  ;;  %v1057_v8 = vrot.slane %v4187_v43, 1 }
  0x4a   : > { %v4309_v29 = vsel %vm1014_vm3, %v1048_v17, %v1049_v18  ;;  %v4328_v37 = vsel %vm1014_vm3, %v1051_v7, %v1052_v58  ;;  %v4351_v17 = vpack.c.bf16 %v335_v59, %v334_v57  ;;  %v4353_v18 = vpack.c.bf16 %v336_v55, %v336_v55 }
  0x4b   : > { %v4349_v20 = vsel %vm1014_vm3, %v1057_v8, %v1058_v63  ;;  %v2146_v58 = vsel %vm621_vm0, %v4202_v61, 0  ;;  %v1015_v61 = vrot.slane %v3963_v9, 1  ;;  %v1315_v63 = vsel %vm621_vm0, %v2995_v21, 0 }
  0x4c   : > { %v1724_v11 = vrot.slane %v4351_v17, 1  ;;  %v1725_v60 = vrot.slane %v4353_v18, 1 }
  0x4d   : > { %v1017_v8 = vsel %vm1014_vm3, %v1015_v61, %v1016_v45 }
  0x4e   : > { %v4369_v7 = vsel %vm1014_vm3, %v1724_v11, %v1725_v60 }
  0x4f   : > { %3281 = vmatmul.mubr.msk.bf16.gmra.mrb[24].mxu1 %vm572_vm2, %v4257_v24 }
  0x50   : > { %3435 = vmatmul.mubr.msk.bf16.gmra.mrb[8].mxu0 %vm572_vm2, %v4262_v54  ;;  %3284 = vmatprep.mubr.msk.bf16.mxu1 %vm572_vm2, %v4265_v41 }
  0x51   : > { %3438 = vmatprep.mubr.msk.bf16.mxu0 %vm572_vm2, %v4268_v26 }
  0x57   : > { %3285 = vmatmul.mubr.msk.bf16.gmra.mrb[28].mxu1 %vm572_vm2, %v4283_v30 }
  0x58   : > { %3439 = vmatmul.mubr.msk.bf16.gmra.mrb[12].mxu0 %vm572_vm2, %v4286_v49  ;;  %3290 = vmatprep.mubr.msk.bf16.mxu1 %vm572_vm2, %v3963_v9  ;;  %v338_v9 = vld [vmem:[%s3958_s8 + $0x1a0] sm:$0xff] }
  0x59   : > { %3442 = vmatprep.mubr.msk.bf16.mxu0 %vm572_vm2, %v4289_v62 }
  0x5f   : > { %3291 = vmatmul.mubr.msk.bf16.vlgmr.msra.gmra.mrb[0].mxu1 %vm572_vm2, %v3970_v14 }
  0x60   : > { %3323 = vmatpush3.bf16.msra.mxu1 %v1114_v16  ;;  %3443 = vmatmul.mubr.msk.bf16.gmra.mrb[16].mxu0 %vm572_vm2, %v4306_v22  ;;  %v4356_v16 = vsel %vm1014_vm3, %v1060_v42, %v1061_v46 }
  0x61   : > { %3294 = vmatprep.mubr.msk.bf16.mxu1 %vm572_vm2, %v3981_v23  ;;  %3446 = vmatprep.mubr.msk.bf16.mxu0 %vm572_vm2, %v4309_v29 }
  0x62   : > { %3821 = vmatprep.subr.msk.bf16.mxu1 %vm621_vm0, %v2995_v21 }
  0x67   : > { %3295 = vmatmul.mubr.msk.bf16.gmra.mrb[4].mxu1 %vm572_vm2, %v3998_v44 }
  0x68   : > { %3447 = vmatmul.mubr.msk.bf16.gmra.mrb[20].mxu0 %vm572_vm2, %v4328_v37  ;;  %3298 = vmatprep.mubr.msk.bf16.mxu1 %vm572_vm2, %v4002_v48 }
  0x69   : > { %3450 = vmatprep.mubr.msk.bf16.mxu0 %vm572_vm2, %v4331_v12 }
  0x6f   : > { %3299 = vmatmul.mubr.msk.bf16.gmra.mrb[8].mxu1 %vm572_vm2, %v4030_v5 }
  0x70   : > { %3451 = vmatmul.mubr.msk.bf16.gmra.mrb[24].mxu0 %vm572_vm2, %v4349_v20  ;;  %3302 = vmatprep.mubr.msk.bf16.mxu1 %vm572_vm2, %v4042_v13 }
  0x71   : > { %3454 = vmatprep.mubr.msk.bf16.mxu0 %vm572_vm2, %v4356_v16 }
  0x77   : > { %3303 = vmatmul.mubr.msk.bf16.gmra.mrb[12].mxu1 %vm572_vm2, %v4062_v31 }
  0x78   : > { %3455 = vmatmul.mubr.msk.bf16.gmra.mrb[28].mxu0 %vm572_vm2, %v4369_v7  ;;  %3306 = vmatprep.mubr.msk.bf16.mxu1 %vm572_vm2, %v4079_v47 }
  0x79   : > { %3460 = vmatprep.mubr.msk.bf16.mxu0 %vm572_vm2, %v3981_v23 }
  0x7f   : > { %3307 = vmatmul.mubr.msk.bf16.gmra.mrb[16].mxu1 %vm572_vm2, %v4100_v2 }
  0x80   : > { %3461 = vmatmul.mubr.msk.bf16.vlgmr.msra.gmra.mrb[0].mxu0 %vm572_vm2, %v3998_v44  ;;  %3310 = vmatprep.mubr.msk.bf16.mxu1 %vm572_vm2, %v4102_v4 }
  0x81   : > { %3493 = vmatpush3.bf16.msra.mxu0 %v2146_v58  ;;  %3464 = vmatprep.mubr.msk.bf16.mxu0 %vm572_vm2, %v4002_v48 }
  0x82   : > { %3827 = vmatprep.subr.msk.bf16.mxu0 %vm621_vm0, %v3080_v32 }
  0x87   : > { %3311 = vmatmul.mubr.msk.bf16.gmra.mrb[20].mxu1 %vm572_vm2, %v4135_v40 }
  0x88   : > { %3465 = vmatmul.mubr.msk.bf16.gmra.mrb[4].mxu0 %vm572_vm2, %v4030_v5  ;;  %3314 = vmatprep.mubr.msk.bf16.mxu1 %vm572_vm2, %v4143_v15 }
  0x89   : > { %3468 = vmatprep.mubr.msk.bf16.mxu0 %vm572_vm2, %v4042_v13 }
  0x8f   : > { %3315 = vmatmul.mubr.msk.bf16.gmra.mrb[24].mxu1 %vm572_vm2, %v4182_v38 }
  0x90   : > { %3469 = vmatmul.mubr.msk.bf16.gmra.mrb[8].mxu0 %vm572_vm2, %v4062_v31  ;;  %3318 = vmatprep.mubr.msk.bf16.mxu1 %vm572_vm2, %v4187_v43 }
  0x91   : > { %3472 = vmatprep.mubr.msk.bf16.mxu0 %vm572_vm2, %v4079_v47 }
  0x97   : > { %3319 = vmatmul.mubr.msk.bf16.gmra.mrb[28].mxu1 %vm572_vm2, %v4230_v39 }
  0x98   : > { %3473 = vmatmul.mubr.msk.bf16.gmra.mrb[12].mxu0 %vm572_vm2, %v4100_v2  ;;  %3324 = vmatprep.mubr.msk.bf16.mxu1 %vm572_vm2, %v1017_v8 }
  0x99   : > { %3476 = vmatprep.mubr.msk.bf16.mxu0 %vm572_vm2, %v4102_v4 }
  0x9f   : > { %3325 = vmatmul.mubr.msk.bf16.vlgmr.msra.gmra.mrb[0].mxu1 %vm572_vm2, %v4146_v53  ;;  %v2352_v53 = vsel %vm621_vm0, %v3080_v32, 0 }
  0xa0   : > { %3357 = vmatpush3.bf16.msra.mxu1 %v1315_v63  ;;  %3477 = vmatmul.mubr.msk.bf16.gmra.mrb[16].mxu0 %vm572_vm2, %v4135_v40 }
  0xa1   : > { %3328 = vmatprep.mubr.msk.bf16.mxu1 %vm572_vm2, %v4177_v35  ;;  %3480 = vmatprep.mubr.msk.bf16.mxu0 %vm572_vm2, %v4143_v15 }
  0xa2   : > { %3823 = vmatprep.subr.msk.bf16.mxu1 %vm621_vm0, %v3933_v1  ;;  %v337_v1 = vld [vmem:[%s3958_s8 + $0x198] sm:$0xff] }
  0xa3   : > { %v4448_v10 = vpack.c.bf16 %v338_v9, %v337_v1 }
  0xa7   : > { %3329 = vmatmul.mubr.msk.bf16.gmra.mrb[4].mxu1 %vm572_vm2, %v4192_v51 }
  0xa8   : > { %3481 = vmatmul.mubr.msk.bf16.gmra.mrb[20].mxu0 %vm572_vm2, %v4182_v38  ;;  %3332 = vmatprep.mubr.msk.bf16.mxu1 %vm572_vm2, %v4226_v28 }
  0xa9   : > { %3484 = vmatprep.mubr.msk.bf16.mxu0 %vm572_vm2, %v4187_v43 }
  0xaf   : > { %3333 = vmatmul.mubr.msk.bf16.gmra.mrb[8].mxu1 %vm572_vm2, %v4239_v56 }
  0xb0   : > { %3485 = vmatmul.mubr.msk.bf16.gmra.mrb[24].mxu0 %vm572_vm2, %v4230_v39  ;;  %3336 = vmatprep.mubr.msk.bf16.mxu1 %vm572_vm2, %v4262_v54 }
  0xb1   : > { %3488 = vmatprep.mubr.msk.bf16.mxu0 %vm572_vm2, %v4351_v17 }
  0xb7   : > { %3337 = vmatmul.mubr.msk.bf16.gmra.mrb[12].mxu1 %vm572_vm2, %v4268_v26 }
  0xb8   : > { %3489 = vmatmul.mubr.msk.bf16.gmra.mrb[28].mxu0 %vm572_vm2, %v4448_v10  ;;  %3340 = vmatprep.mubr.msk.bf16.mxu1 %vm572_vm2, %v4286_v49 }
  0xb9   : > { %3494 = vmatprep.mubr.msk.bf16.mxu0 %vm572_vm2, %v4027_v0  ;;  %v4825_v0 = vld [vmem:[#allocation2_spill] sm:$0xff] }
  0xbf   : > { %3341 = vmatmul.mubr.msk.bf16.gmra.mrb[16].mxu1 %vm572_vm2, %v4289_v62 }
  0xc0   : > { %3495 = vmatmul.mubr.msk.bf16.vlgmr.msra.gmra.mrb[0].mxu0 %vm572_vm2, %v4059_v27  ;;  %3344 = vmatprep.mubr.msk.bf16.mxu1 %vm572_vm2, %v4306_v22  ;;  %v1512_v27 = vshll.u32 %v4351_v17, 16 }
  0xc1   : > { %3527 = vmatpush3.bf16.msra.mxu0 %v2352_v53  ;;  %3498 = vmatprep.mubr.msk.bf16.mxu0 %vm572_vm2, %v4069_v34 }
  0xc2   : > { %v1514_v34 = vrot.slane %v1512_v27, 1 }
  0xc7   : > { %3345 = vmatmul.mubr.msk.bf16.gmra.mrb[20].mxu1 %vm572_vm2, %v4309_v29 }
  0xc8   : > { %3499 = vmatmul.mubr.msk.bf16.gmra.mrb[4].mxu0 %vm572_vm2, %v4084_v50  ;;  %3348 = vmatprep.mubr.msk.bf16.mxu1 %vm572_vm2, %v4328_v37  ;;  %v1517_v50 = vshll.u32 %v4353_v18, 16 }
  0xc9   : > { %3502 = vmatprep.mubr.msk.bf16.mxu0 %vm572_vm2, %v4105_v6  ;;  %v339_v6 = vld [vmem:[%s3958_s8 + $0x1a8] sm:$0x3] }
  0xcf   : > { %3349 = vmatmul.mubr.msk.bf16.gmra.mrb[24].mxu1 %vm572_vm2, %v4331_v12 }
  0xd0   : > { %3503 = vmatmul.mubr.msk.bf16.gmra.mrb[8].mxu0 %vm572_vm2, %v4111_v19  ;;  %3352 = vmatprep.mubr.msk.bf16.mxu1 %vm572_vm2, %v4349_v20  ;;  %v1519_v19 = vrot.slane %v1517_v50, 1 }
  0xd1   : > { %3506 = vmatprep.mubr.msk.bf16.mxu0 %vm572_vm2, %v4141_v52  ;;  %v2129_v52 = vshrl.u32 %v4448_v10, 16 }
  0xd7   : > { %3353 = vmatmul.mubr.msk.bf16.gmra.mrb[28].mxu1 %vm572_vm2, %v4356_v16 }
  0xd8   : > { %3507 = vmatmul.mubr.msk.bf16.gmra.mrb[12].mxu0 %vm572_vm2, %v4174_v33  ;;  %3358 = vmatprep.mubr.msk.bf16.mxu1 %vm572_vm2, %v3970_v14  ;;  %v1510_v14 = vshrl.u32 %v4351_v17, 16 }
  0xd9   : > { %3510 = vmatprep.mubr.msk.bf16.mxu0 %vm572_vm2, %v4180_v36 }
  0xdf   : > { %3359 = vmatmul.mubr.msk.bf16.vlgmr.msra.gmra.mrb[0].mxu1 %vm572_vm2, %v3981_v23  ;;  %v2131_v23 = vshll.u32 %v4448_v10, 16 }
  0xe0   : > { %3561 = vmatpush3.bf16.msra.mxu1 %v3941_v3  ;;  %3511 = vmatmul.mubr.msk.bf16.gmra.mrb[16].mxu0 %vm572_vm2, %v4223_v25  ;;  %v375_v3 = vpack.c.bf16 %v339_v6, %v339_v6 }
  0xe1   : > { %3362 = vmatprep.mubr.msk.bf16.mxu1 %vm572_vm2, %v3998_v44  ;;  %3514 = vmatprep.mubr.msk.bf16.mxu0 %vm572_vm2, %v4825_v0  ;;  %v1515_v44 = vor.u32 %v1514_v34, %v1510_v14  ;;  %v2133_v21 = vrot.slane %v2131_v23, 1 }
  0xe2   : > { %v2136_v42 = vshll.u32 %v375_v3, 16 }
  0xe4   : > { %v2138_v46 = vrot.slane %v2136_v42, 1 }
  0xe7   : > { %3363 = vmatmul.mubr.msk.bf16.gmra.mrb[4].mxu1 %vm572_vm2, %v4002_v48  ;;  %v1520_v48 = vsel %vm377_vm1, %v1515_v44, %v1519_v19 }
  0xe8   : > { %3515 = vmatmul.mubr.msk.bf16.gmra.mrb[20].mxu0 %vm572_vm2, %v4257_v24  ;;  %3366 = vmatprep.mubr.msk.bf16.mxu1 %vm572_vm2, %v4030_v5  ;;  %v2134_v5 = vor.u32 %v2133_v21, %v2129_v52 }
  0xe9   : > { %3518 = vmatprep.mubr.msk.bf16.mxu0 %vm572_vm2, %v4265_v41 }
  0xea   : > { %v2139_v57 = vsel %vm377_vm1, %v2134_v5, %v2138_v46 }
  0xef   : > { %3367 = vmatmul.mubr.msk.bf16.gmra.mrb[8].mxu1 %vm572_vm2, %v4042_v13  ;;  %v2343_v13 = vrot.slane %v4448_v10, 1 }
  0xf0   : > { %3519 = vmatmul.mubr.msk.bf16.gmra.mrb[24].mxu0 %vm572_vm2, %v4283_v30  ;;  %3370 = vmatprep.mubr.msk.bf16.mxu1 %vm572_vm2, %v4062_v31  ;;  %v2344_v31 = vrot.slane %v375_v3, 1 }
  0xf1   : > { %3522 = vmatprep.mubr.msk.bf16.mxu0 %vm572_vm2, %v1520_v48 }
  0xf7   : > { %3371 = vmatmul.mubr.msk.bf16.gmra.mrb[12].mxu1 %vm572_vm2, %v4079_v47  ;;  %v2345_v47 = vsel %vm1014_vm3, %v2343_v13, %v2344_v31 }
  0xf8   : > { %3523 = vmatmul.mubr.msk.bf16.gmra.mrb[28].mxu0 %vm572_vm2, %v2139_v57  ;;  %3374 = vmatprep.mubr.msk.bf16.mxu1 %vm572_vm2, %v4100_v2  ;;  %v3878_v2 = vmov 0.0  }
  0xf9   : > { %3528 = vmatprep.mubr.msk.bf16.mxu0 %vm572_vm2, %v4177_v35  ;;  %284 = vst.msk [vmem:[%s4594_s25] sm:$0x1] %vm283_vm4, %v3878_v2  ;;  %285 = vst.msk [vmem:[%s4600_s28] sm:$0x1] %vm283_vm4, %v3878_v2 }
  0xff   : > { %3375 = vmatmul.mubr.msk.bf16.gmra.mrb[16].mxu1 %vm572_vm2, %v4102_v4 }
 0x100   : > { %3529 = vmatmul.mubr.msk.bf16.vlgmr.msra.gmra.mrb[0].mxu0 %vm572_vm2, %v4192_v51  ;;  %3378 = vmatprep.mubr.msk.bf16.mxu1 %vm572_vm2, %v4135_v40 }
 0x101   : > { %3532 = vmatprep.mubr.msk.bf16.mxu0 %vm572_vm2, %v4226_v28 }
 0x107   : > { %3379 = vmatmul.mubr.msk.bf16.gmra.mrb[20].mxu1 %vm572_vm2, %v4143_v15 }
 0x108   : > { %3533 = vmatmul.mubr.msk.bf16.gmra.mrb[4].mxu0 %vm572_vm2, %v4239_v56  ;;  %3382 = vmatprep.mubr.msk.bf16.mxu1 %vm572_vm2, %v4182_v38 }
 0x109   : > { %3536 = vmatprep.mubr.msk.bf16.mxu0 %vm572_vm2, %v4262_v54 }
 0x10f   : > { %3383 = vmatmul.mubr.msk.bf16.gmra.mrb[24].mxu1 %vm572_vm2, %v4187_v43 }
 0x110   : > { %3537 = vmatmul.mubr.msk.bf16.gmra.mrb[8].mxu0 %vm572_vm2, %v4268_v26  ;;  %3386 = vmatprep.mubr.msk.bf16.mxu1 %vm572_vm2, %v4230_v39 }
 0x111   : > { %3540 = vmatprep.mubr.msk.bf16.mxu0 %vm572_vm2, %v4286_v49 }
 0x117   : > { %3387 = vmatmul.mubr.msk.bf16.gmra.mrb[28].mxu1 %vm572_vm2, %v4351_v17 }
 0x118   : > { %3541 = vmatmul.mubr.msk.bf16.gmra.mrb[12].mxu0 %vm572_vm2, %v4289_v62  ;;  %3408 = vmatprep.mubr.msk.bf16.mxu1 %vm572_vm2, %v4174_v33 }
 0x119   : > { %3544 = vmatprep.mubr.msk.bf16.mxu0 %vm572_vm2, %v4306_v22 }
 0x11f   : > { %3409 = vmatmul.mubr.msk.bf16.vlgmr.msra.gmra.mrb[16].mxu1 %vm572_vm2, %v4180_v36 }
 0x120   : > { %3545 = vmatmul.mubr.msk.bf16.gmra.mrb[16].mxu0 %vm572_vm2, %v4309_v29  ;;  %3412 = vmatprep.mubr.msk.bf16.mxu1 %vm572_vm2, %v4223_v25 }
 0x121   : > { %3548 = vmatprep.mubr.msk.bf16.mxu0 %vm572_vm2, %v4328_v37 }
 0x127   : > { %3413 = vmatmul.mubr.msk.bf16.gmra.mrb[20].mxu1 %vm572_vm2, %v4825_v0 }
 0x128   : > { %3549 = vmatmul.mubr.msk.bf16.gmra.mrb[20].mxu0 %vm572_vm2, %v4331_v12  ;;  %3416 = vmatprep.mubr.msk.bf16.mxu1 %vm572_vm2, %v4257_v24 }
 0x129   : > { %3552 = vmatprep.mubr.msk.bf16.mxu0 %vm572_vm2, %v4349_v20 }
 0x12f   : > { %3417 = vmatmul.mubr.msk.bf16.gmra.mrb[24].mxu1 %vm572_vm2, %v4265_v41 }
 0x130   : > { %3553 = vmatmul.mubr.msk.bf16.gmra.mrb[24].mxu0 %vm572_vm2, %v4356_v16  ;;  %3420 = vmatprep.mubr.msk.bf16.mxu1 %vm572_vm2, %v4283_v30  ;;  %v4626_v30 = vld [vmem:[%s4818_s2] ss:$0 sm:$0xff] }
 0x131   : > { %3556 = vmatprep.mubr.msk.bf16.mxu0 %vm572_vm2, %v4369_v7 }
 0x137   : > { %3421 = vmatmul.mubr.msk.bf16.gmra.mrb[28].mxu1 %vm572_vm2, %v1520_v48 }
 0x138   : > { %3557 = vmatmul.mubr.msk.bf16.gmra.mrb[28].mxu0 %vm572_vm2, %v2345_v47 }
 0x1b2   : > { %v3360_v4 = vpop.f32.mrb[0].mxu1 }
 0x1b3   : > { %v1351_v40 = vpop.f32.mrb[1].mxu1 }
 0x1b4   : > { %v3361_v15 = vpop.f32.mrb[2].mxu1 }
 0x1b5   : > { %v1354_v33 = vpop.f32.mrb[3].mxu1 }
 0x1ba   : > { %v3364_v35 = vpop.f32.mrb[4].mxu1 }
 0x1bb   : > { %v1367_v36 = vpop.f32.mrb[5].mxu1 }
 0x1bc   : > { %v3365_v38 = vpop.f32.mrb[6].mxu1 }
 0x1bd   : > { %v1370_v43 = vpop.f32.mrb[7].mxu1 }
 0x1c2   : > { %v4606_v51 = vpop.f32.mrb[8].mxu1 }
 0x1c3   : > { %v4608_v25 = vpop.f32.mrb[9].mxu1 }
 0x1c4   : > { %v4610_v28 = vpop.f32.mrb[10].mxu1 }
 0x1c5   : > { %v4612_v39 = vpop.f32.mrb[11].mxu1 }
 0x1ca   : > { %v4614_v41 = vpop.f32.mrb[12].mxu1 }
 0x1cb   : > { %v4616_v56 = vpop.f32.mrb[13].mxu1 }
 0x1cc   : > { %v4618_v24 = vpop.f32.mrb[14].mxu1 }
 0x1cd   : > { %v4620_v54 = vpop.f32.mrb[15].mxu1 }
 0x1d3   : > { %v3530_v26 = vpop.f32.mrb[0].mxu0 }
 0x1d4   : > { %v3562_v49 = vadd.f32 %v3530_v26, %v3360_v4  ;;  %v2388_v62 = vpop.f32.mrb[1].mxu0 }
 0x1d5   : > { %v3563_v22 = vadd.f32 %v2388_v62, %v1351_v40  ;;  %v3531_v29 = vpop.f32.mrb[2].mxu0 }
 0x1d6   : > { %v2556_v37 = vadd.f32 %v3562_v49, %v4626_v30  ;;  %v3564_v12 = vadd.f32 %v3531_v29, %v3361_v15  ;;  %v2391_v59 = vpop.f32.mrb[3].mxu0 }
 0x1d7   : > { %v2554_v55 = vadd.f32 %v3563_v22, %v4626_v30  ;;  %v3565_v20 = vadd.f32 %v2391_v59, %v1354_v33 }
 0x1d8   : > { %2765 = vst.msk [vmem:[%s4631_s9 + $0x10] sm:$0xff] %vm572_vm2, %v2556_v37  ;;  %v2557_v17 = vadd.f32 %v3564_v12, %v4626_v30  ;;  %v2662_v11 = vmul.f32 %v2556_v37, %v2556_v37  ;;  %v2590_v1 = vsel %vm572_vm2, %v2556_v37, 0.0 }
 0x1d9   : > { %v2660_v18 = vmul.f32 %v2554_v55, %v2554_v55  ;;  %2763 = vst.msk [vmem:[%s4631_s9] sm:$0xff] %vm572_vm2, %v2554_v55  ;;  %v2555_v16 = vadd.f32 %v3565_v20, %v4626_v30  ;;  %v2587_v60 = vsel %vm572_vm2, %v2554_v55, 0.0 }
 0x1da   : > { %2766 = vst.msk [vmem:[%s4631_s9 + $0x18] sm:$0xff] %vm572_vm2, %v2557_v17  ;;  %v2663_v61 = vmul.f32 %v2557_v17, %v2557_v17  ;;  %v2695_v3 = vsel %vm572_vm2, %v2662_v11, 0.0  ;;  %v2592_v23 = vsel %vm572_vm2, %v2557_v17, 0.0 }
 0x1db   : > { %v2588_v7 = vsel %vm572_vm2, %v2555_v16, 0.0  ;;  %v2661_v58 = vmul.f32 %v2555_v16, %v2555_v16  ;;  %2764 = vst.msk [vmem:[%s4631_s9 + $0x8] sm:$0xff] %vm572_vm2, %v2555_v16  ;;  %v3534_v32 = vpop.f32.mrb[4].mxu0  ;;  %v2692_v9 = vsel %vm572_vm2, %v2660_v18, 0.0 }
 0x1dc   : > { %v2589_v45 = vadd.f32 %v2588_v7, %v2587_v60  ;;  %v3566_v8 = vadd.f32 %v3534_v32, %v3364_v35  ;;  %v2404_v63 = vpop.f32.mrb[5].mxu0  ;;  %v2697_v52 = vsel %vm572_vm2, %v2663_v61, 0.0 }
 0x1dd   : > { %v2693_v10 = vsel %vm572_vm2, %v2661_v58, 0.0  ;;  %v3567_v53 = vadd.f32 %v2404_v63, %v1367_v36  ;;  %v3535_v0 = vpop.f32.mrb[6].mxu0 }
 0x1de   : > { %v2591_v27 = vadd.f32 %v2590_v1, %v2589_v45  ;;  %v2694_v14 = vadd.f32 %v2693_v10, %v2692_v9  ;;  %v2560_v34 = vadd.f32 %v3566_v8, %v4626_v30  ;;  %v3568_v50 = vadd.f32 %v3535_v0, %v3365_v38  ;;  %v2407_v6 = vpop.f32.mrb[7].mxu0 }
 0x1df   : > { %v2558_v44 = vadd.f32 %v3567_v53, %v4626_v30  ;;  %v3569_v19 = vadd.f32 %v2407_v6, %v1370_v43 }
 0x1e0   : > { %v2696_v21 = vadd.f32 %v2695_v3, %v2694_v14  ;;  %2769 = vst.msk [vmem:[%s4631_s9 + $0x30] sm:$0xff] %vm572_vm2, %v2560_v34  ;;  %v2593_v42 = vadd.f32 %v2592_v23, %v2591_v27  ;;  %v2561_v46 = vadd.f32 %v3568_v50, %v4626_v30  ;;  %v2666_v47 = vmul.f32 %v2560_v34, %v2560_v34 }
 0x1e1   : > { %v2594_v48 = vsel %vm572_vm2, %v2558_v44, 0.0  ;;  %v2664_v5 = vmul.f32 %v2558_v44, %v2558_v44  ;;  %2767 = vst.msk [vmem:[%s4631_s9 + $0x20] sm:$0xff] %vm572_vm2, %v2558_v44  ;;  %v2559_v57 = vadd.f32 %v3569_v19, %v4626_v30  ;;  %v2598_v43 = vsel %vm572_vm2, %v2560_v34, 0.0 }
 0x1e2   : > { %v2595_v13 = vadd.f32 %v2594_v48, %v2593_v42  ;;  %v2698_v31 = vadd.f32 %v2697_v52, %v2696_v21  ;;  %2770 = vst.msk [vmem:[%s4631_s9 + $0x38] sm:$0xff] %vm572_vm2, %v2561_v46  ;;  %v2667_v26 = vmul.f32 %v2561_v46, %v2561_v46 }
 0x1e3   : > { %v2699_v2 = vsel %vm572_vm2, %v2664_v5, 0.0  ;;  %v2596_v4 = vsel %vm572_vm2, %v2559_v57, 0.0  ;;  %2768 = vst.msk [vmem:[%s4631_s9 + $0x28] sm:$0xff] %vm572_vm2, %v2559_v57  ;;  %v3538_v40 = vpop.f32.mrb[8].mxu0  ;;  %v2665_v35 = vmul.f32 %v2559_v57, %v2559_v57 }
 0x1e4   : > { %v2700_v15 = vadd.f32 %v2699_v2, %v2698_v31  ;;  %v2597_v33 = vadd.f32 %v2596_v4, %v2595_v13  ;;  %v3570_v36 = vadd.f32 %v3538_v40, %v4606_v51  ;;  %v2420_v38 = vpop.f32.mrb[9].mxu0  ;;  %v2600_v51 = vsel %vm572_vm2, %v2561_v46, 0.0 }
 0x1e5   : > { %v3571_v49 = vadd.f32 %v2420_v38, %v4608_v25  ;;  %v3539_v62 = vpop.f32.mrb[10].mxu0  ;;  %v2701_v29 = vsel %vm572_vm2, %v2665_v35, 0.0  ;;  %v2703_v25 = vsel %vm572_vm2, %v2666_v47, 0.0  ;;  %v2705_v58 = vsel %vm572_vm2, %v2667_v26, 0.0 }
 0x1e6   : > { %v2599_v22 = vadd.f32 %v2598_v43, %v2597_v33  ;;  %v2564_v37 = vadd.f32 %v3570_v36, %v4626_v30  ;;  %v3572_v12 = vadd.f32 %v3539_v62, %v4610_v28  ;;  %v2423_v59 = vpop.f32.mrb[11].mxu0  ;;  %v2702_v55 = vadd.f32 %v2701_v29, %v2700_v15 }
 0x1e7   : > { %v2562_v20 = vadd.f32 %v3571_v49, %v4626_v30  ;;  %v3573_v17 = vadd.f32 %v2423_v59, %v4612_v39 }
 0x1e8   : > { %2773 = vst.msk [vmem:[%s4631_s9 + $0x50] sm:$0xff] %vm572_vm2, %v2564_v37  ;;  %v2601_v18 = vadd.f32 %v2600_v51, %v2599_v22  ;;  %v2565_v16 = vadd.f32 %v3572_v12, %v4626_v30  ;;  %v2704_v11 = vadd.f32 %v2703_v25, %v2702_v55  ;;  %v2670_v1 = vmul.f32 %v2564_v37, %v2564_v37 }
 0x1e9   : > { %v2602_v28 = vsel %vm572_vm2, %v2562_v20, 0.0  ;;  %v2668_v60 = vmul.f32 %v2562_v20, %v2562_v20  ;;  %2771 = vst.msk [vmem:[%s4631_s9 + $0x40] sm:$0xff] %vm572_vm2, %v2562_v20  ;;  %v2563_v7 = vadd.f32 %v3573_v17, %v4626_v30  ;;  %v2606_v0 = vsel %vm572_vm2, %v2564_v37, 0.0 }
 0x1ea   : > { %v2603_v32 = vadd.f32 %v2602_v28, %v2601_v18  ;;  %2774 = vst.msk [vmem:[%s4631_s9 + $0x58] sm:$0xff] %vm572_vm2, %v2565_v16  ;;  %v2706_v39 = vadd.f32 %v2705_v58, %v2704_v11  ;;  %v2671_v6 = vmul.f32 %v2565_v16, %v2565_v16  ;;  %v2711_v48 = vsel %vm572_vm2, %v2670_v1, 0.0 }
 0x1eb   : > { %v2707_v61 = vsel %vm572_vm2, %v2668_v60, 0.0  ;;  %v2604_v45 = vsel %vm572_vm2, %v2563_v7, 0.0  ;;  %v2669_v8 = vmul.f32 %v2563_v7, %v2563_v7  ;;  %2772 = vst.msk [vmem:[%s4631_s9 + $0x48] sm:$0xff] %vm572_vm2, %v2563_v7  ;;  %v3542_v63 = vpop.f32.mrb[12].mxu0 }
 0x1ec   : > { %v2605_v9 = vadd.f32 %v2604_v45, %v2603_v32  ;;  %v3574_v10 = vadd.f32 %v3542_v63, %v4614_v41  ;;  %v2436_v53 = vpop.f32.mrb[13].mxu0  ;;  %v2708_v27 = vadd.f32 %v2707_v61, %v2706_v39  ;;  %v2608_v41 = vsel %vm572_vm2, %v2565_v16, 0.0 }
 0x1ed   : > { %v2709_v14 = vsel %vm572_vm2, %v2669_v8, 0.0  ;;  %v3575_v34 = vadd.f32 %v2436_v53, %v4616_v56  ;;  %v3543_v50 = vpop.f32.mrb[14].mxu0  ;;  %v2713_v31 = vsel %vm572_vm2, %v2671_v6, 0.0 }
 0x1ee   : > { %v2607_v3 = vadd.f32 %v2606_v0, %v2605_v9  ;;  %v2568_v23 = vadd.f32 %v3574_v10, %v4626_v30  ;;  %v3576_v44 = vadd.f32 %v3543_v50, %v4618_v24  ;;  %v2439_v19 = vpop.f32.mrb[15].mxu0  ;;  %v2710_v52 = vadd.f32 %v2709_v14, %v2708_v27 }
 0x1ef   : > { %v2566_v21 = vadd.f32 %v3575_v34, %v4626_v30  ;;  %v3577_v42 = vadd.f32 %v2439_v19, %v4620_v54 }
 0x1f0   : > { %2777 = vst.msk [vmem:[%s4631_s9 + $0x70] sm:$0xff] %vm572_vm2, %v2568_v23  ;;  %v2609_v56 = vadd.f32 %v2608_v41, %v2607_v3  ;;  %v2569_v5 = vadd.f32 %v3576_v44, %v4626_v30  ;;  %v2712_v46 = vadd.f32 %v2711_v48, %v2710_v52  ;;  %v2674_v36 = vmul.f32 %v2568_v23, %v2568_v23 }
 0x1f1   : > { %v2610_v24 = vsel %vm572_vm2, %v2566_v21, 0.0  ;;  %v2672_v57 = vmul.f32 %v2566_v21, %v2566_v21  ;;  %2775 = vst.msk [vmem:[%s4631_s9 + $0x60] sm:$0xff] %vm572_vm2, %v2566_v21  ;;  %v2567_v13 = vadd.f32 %v3577_v42, %v4626_v30  ;;  %v2614_v62 = vsel %vm572_vm2, %v2568_v23, 0.0 }
 0x1f2   : > { %v2611_v47 = vadd.f32 %v2610_v24, %v2609_v56  ;;  %2778 = vst.msk [vmem:[%s4631_s9 + $0x78] sm:$0xff] %vm572_vm2, %v2569_v5  ;;  %v3410_v54 = vpop.f32.mrb[16].mxu1  ;;  %v2714_v2 = vadd.f32 %v2713_v31, %v2712_v46  ;;  %v2675_v51 = vmul.f32 %v2569_v5, %v2569_v5  ;;  %v2616_v18 = vsel %vm572_vm2, %v2569_v5, 0.0 }
 0x1f3   : > { %v2715_v4 = vsel %vm572_vm2, %v2672_v57, 0.0  ;;  %v2612_v40 = vsel %vm572_vm2, %v2567_v13, 0.0  ;;  %v2673_v15 = vmul.f32 %v2567_v13, %v2567_v13  ;;  %2776 = vst.msk [vmem:[%s4631_s9 + $0x68] sm:$0xff] %vm572_vm2, %v2567_v13  ;;  %v3546_v33 = vpop.f32.mrb[16].mxu0  ;;  %v1627_v35 = vpop.f32.mrb[17].mxu1  ;;  %v2719_v60 = vsel %vm572_vm2, %v2674_v36, 0.0 }
 0x1f4   : > { %v2613_v38 = vadd.f32 %v2612_v40, %v2611_v47  ;;  %v3578_v43 = vadd.f32 %v3546_v33, %v3410_v54  ;;  %v2452_v26 = vpop.f32.mrb[17].mxu0  ;;  %v3411_v49 = vpop.f32.mrb[18].mxu1  ;;  %v2716_v22 = vadd.f32 %v2715_v4, %v2714_v2  ;;  %v2721_v8 = vsel %vm572_vm2, %v2675_v51, 0.0 }
 0x1f5   : > { %v2717_v29 = vsel %vm572_vm2, %v2673_v15, 0.0  ;;  %v3579_v37 = vadd.f32 %v2452_v26, %v1627_v35  ;;  %v3547_v12 = vpop.f32.mrb[18].mxu0  ;;  %v1630_v59 = vpop.f32.mrb[19].mxu1 }
 0x1f6   : > { %v2615_v55 = vadd.f32 %v2614_v62, %v2613_v38  ;;  %v2572_v20 = vadd.f32 %v3578_v43, %v4626_v30  ;;  %v3580_v17 = vadd.f32 %v3547_v12, %v3411_v49  ;;  %v2455_v25 = vpop.f32.mrb[19].mxu0  ;;  %v2718_v16 = vadd.f32 %v2717_v29, %v2716_v22 }
 0x1f7   : > { %v2570_v11 = vadd.f32 %v3579_v37, %v4626_v30  ;;  %v3581_v28 = vadd.f32 %v2455_v25, %v1630_v59 }
 0x1f8   : > { %2781 = vst.msk [vmem:[%s4631_s9 + $0x90] sm:$0xff] %vm572_vm2, %v2572_v20  ;;  %v2617_v7 = vadd.f32 %v2616_v18, %v2615_v55  ;;  %v2573_v58 = vadd.f32 %v3580_v17, %v4626_v30  ;;  %v2720_v32 = vadd.f32 %v2719_v60, %v2718_v16  ;;  %v2678_v34 = vmul.f32 %v2572_v20, %v2572_v20 }
 0x1f9   : > { %v2618_v39 = vsel %vm572_vm2, %v2570_v11, 0.0  ;;  %v2676_v61 = vmul.f32 %v2570_v11, %v2570_v11  ;;  %2779 = vst.msk [vmem:[%s4631_s9 + $0x80] sm:$0xff] %vm572_vm2, %v2570_v11  ;;  %v2571_v45 = vadd.f32 %v3581_v28, %v4626_v30  ;;  %v2622_v44 = vsel %vm572_vm2, %v2572_v20, 0.0 }
 0x1fa   : > { %v2619_v63 = vadd.f32 %v2618_v39, %v2617_v7  ;;  %2782 = vst.msk [vmem:[%s4631_s9 + $0x98] sm:$0xff] %vm572_vm2, %v2573_v58  ;;  %v3414_v1 = vpop.f32.mrb[20].mxu1  ;;  %v2722_v9 = vadd.f32 %v2721_v8, %v2720_v32  ;;  %v2679_v48 = vmul.f32 %v2573_v58, %v2573_v58  ;;  %v2624_v57 = vsel %vm572_vm2, %v2573_v58, 0.0 }
 0x1fb   : > { %v2723_v10 = vsel %vm572_vm2, %v2676_v61, 0.0  ;;  %v2620_v53 = vsel %vm572_vm2, %v2571_v45, 0.0  ;;  %v2677_v0 = vmul.f32 %v2571_v45, %v2571_v45  ;;  %2780 = vst.msk [vmem:[%s4631_s9 + $0x88] sm:$0xff] %vm572_vm2, %v2571_v45  ;;  %v3550_v27 = vpop.f32.mrb[20].mxu0  ;;  %v1643_v14 = vpop.f32.mrb[21].mxu1  ;;  %v2727_v54 = vsel %vm572_vm2, %v2678_v34, 0.0 }
 0x1fc   : > { %v2621_v50 = vadd.f32 %v2620_v53, %v2619_v63  ;;  %v3582_v6 = vadd.f32 %v3550_v27, %v3414_v1  ;;  %v2468_v3 = vpop.f32.mrb[21].mxu0  ;;  %v3415_v23 = vpop.f32.mrb[22].mxu1  ;;  %v2724_v19 = vadd.f32 %v2723_v10, %v2722_v9  ;;  %v2729_v36 = vsel %vm572_vm2, %v2679_v48, 0.0 }
 0x1fd   : > { %v2725_v41 = vsel %vm572_vm2, %v2677_v0, 0.0  ;;  %v3583_v52 = vadd.f32 %v2468_v3, %v1643_v14  ;;  %v3551_v21 = vpop.f32.mrb[22].mxu0  ;;  %v1646_v42 = vpop.f32.mrb[23].mxu1 }
 0x1fe   : > { %v2623_v56 = vadd.f32 %v2622_v44, %v2621_v50  ;;  %v2576_v5 = vadd.f32 %v3582_v6, %v4626_v30  ;;  %v3584_v46 = vadd.f32 %v3551_v21, %v3415_v23  ;;  %v2471_v24 = vpop.f32.mrb[23].mxu0  ;;  %v2726_v13 = vadd.f32 %v2725_v41, %v2724_v19 }
 0x1ff   : > { %v2574_v31 = vadd.f32 %v3583_v52, %v4626_v30  ;;  %v3585_v47 = vadd.f32 %v2471_v24, %v1646_v42 }
 0x200   : > { %2785 = vst.msk [vmem:[%s4631_s9 + $0xb0] sm:$0xff] %vm572_vm2, %v2576_v5  ;;  %v2625_v2 = vadd.f32 %v2624_v57, %v2623_v56  ;;  %v2577_v4 = vadd.f32 %v3584_v46, %v4626_v30  ;;  %v2728_v40 = vadd.f32 %v2727_v54, %v2726_v13  ;;  %v2682_v12 = vmul.f32 %v2576_v5, %v2576_v5 }
 0x201   : > { %v2626_v15 = vsel %vm572_vm2, %v2574_v31, 0.0  ;;  %v2680_v33 = vmul.f32 %v2574_v31, %v2574_v31  ;;  %2783 = vst.msk [vmem:[%s4631_s9 + $0xa0] sm:$0xff] %vm572_vm2, %v2574_v31  ;;  %v2575_v35 = vadd.f32 %v3585_v47, %v4626_v30  ;;  %v2630_v17 = vsel %vm572_vm2, %v2576_v5, 0.0 }
 0x202   : > { %v2627_v38 = vadd.f32 %v2626_v15, %v2625_v2  ;;  %2786 = vst.msk [vmem:[%s4631_s9 + $0xb8] sm:$0xff] %vm572_vm2, %v2577_v4  ;;  %v3418_v43 = vpop.f32.mrb[24].mxu1  ;;  %v2730_v26 = vadd.f32 %v2729_v36, %v2728_v40  ;;  %v2683_v60 = vmul.f32 %v2577_v4, %v2577_v4  ;;  %v2632_v61 = vsel %vm572_vm2, %v2577_v4, 0.0 }
 0x203   : > { %v2731_v49 = vsel %vm572_vm2, %v2680_v33, 0.0  ;;  %v2628_v62 = vsel %vm572_vm2, %v2575_v35, 0.0  ;;  %v2681_v22 = vmul.f32 %v2575_v35, %v2575_v35  ;;  %2784 = vst.msk [vmem:[%s4631_s9 + $0xa8] sm:$0xff] %vm572_vm2, %v2575_v35  ;;  %v3554_v29 = vpop.f32.mrb[24].mxu0  ;;  %v1659_v37 = vpop.f32.mrb[25].mxu1  ;;  %v2735_v1 = vsel %vm572_vm2, %v2682_v12, 0.0 }
 0x204   : > { %v2629_v59 = vadd.f32 %v2628_v62, %v2627_v38  ;;  %v3586_v51 = vadd.f32 %v3554_v29, %v3418_v43  ;;  %v2484_v55 = vpop.f32.mrb[25].mxu0  ;;  %v3419_v20 = vpop.f32.mrb[26].mxu1  ;;  %v2732_v25 = vadd.f32 %v2731_v49, %v2730_v26  ;;  %v2737_v34 = vsel %vm572_vm2, %v2683_v60, 0.0 }
 0x205   : > { %v2733_v18 = vsel %vm572_vm2, %v2681_v22, 0.0  ;;  %v3587_v16 = vadd.f32 %v2484_v55, %v1659_v37  ;;  %v3555_v11 = vpop.f32.mrb[26].mxu0  ;;  %v1662_v28 = vpop.f32.mrb[27].mxu1 }
 0x206   : > { %v2631_v7 = vadd.f32 %v2630_v17, %v2629_v59  ;;  %v2580_v58 = vadd.f32 %v3586_v51, %v4626_v30  ;;  %v3588_v32 = vadd.f32 %v3555_v11, %v3419_v20  ;;  %v2487_v39 = vpop.f32.mrb[27].mxu0  ;;  %v2734_v45 = vadd.f32 %v2733_v18, %v2732_v25 }
 0x207   : > { %v2578_v8 = vadd.f32 %v3587_v16, %v4626_v30  ;;  %v3589_v63 = vadd.f32 %v2487_v39, %v1662_v28 }
 0x208   : > { %2789 = vst.msk [vmem:[%s4631_s9 + $0xd0] sm:$0xff] %vm572_vm2, %v2580_v58  ;;  %v2633_v9 = vadd.f32 %v2632_v61, %v2631_v7  ;;  %v2581_v10 = vadd.f32 %v3588_v32, %v4626_v30  ;;  %v2736_v53 = vadd.f32 %v2735_v1, %v2734_v45  ;;  %v2686_v21 = vmul.f32 %v2580_v58, %v2580_v58 }
 0x209   : > { %v2634_v0 = vsel %vm572_vm2, %v2578_v8, 0.0  ;;  %v2684_v27 = vmul.f32 %v2578_v8, %v2578_v8  ;;  %2787 = vst.msk [vmem:[%s4631_s9 + $0xc0] sm:$0xff] %vm572_vm2, %v2578_v8  ;;  %v2579_v14 = vadd.f32 %v3589_v63, %v4626_v30  ;;  %v2638_v46 = vsel %vm572_vm2, %v2580_v58, 0.0 }
 0x20a   : > { %v2635_v50 = vadd.f32 %v2634_v0, %v2633_v9  ;;  %2790 = vst.msk [vmem:[%s4631_s9 + $0xd8] sm:$0xff] %vm572_vm2, %v2581_v10  ;;  %v3422_v6 = vpop.f32.mrb[28].mxu1  ;;  %v2738_v3 = vadd.f32 %v2737_v34, %v2736_v53  ;;  %v2687_v54 = vmul.f32 %v2581_v10, %v2581_v10  ;;  %v2640_v33 = vsel %vm572_vm2, %v2581_v10, 0.0  ;;  %v2586_v34 = vld [vmem:[%s4594_s25] sm:$0x1] }
 0x20b   : > { %v2739_v23 = vsel %vm572_vm2, %v2684_v27, 0.0  ;;  %v2636_v44 = vsel %vm572_vm2, %v2579_v14, 0.0  ;;  %v2685_v19 = vmul.f32 %v2579_v14, %v2579_v14  ;;  %2788 = vst.msk [vmem:[%s4631_s9 + $0xc8] sm:$0xff] %vm572_vm2, %v2579_v14  ;;  %v3558_v41 = vpop.f32.mrb[28].mxu0  ;;  %v1675_v52 = vpop.f32.mrb[29].mxu1  ;;  %v2743_v43 = vsel %vm572_vm2, %v2686_v21, 0.0 }
 0x20c   : > { %v2637_v42 = vadd.f32 %v2636_v44, %v2635_v50  ;;  %v3590_v48 = vadd.f32 %v3558_v41, %v3422_v6  ;;  %v2500_v56 = vpop.f32.mrb[29].mxu0  ;;  %v3423_v5 = vpop.f32.mrb[30].mxu1  ;;  %v2740_v24 = vadd.f32 %v2739_v23, %v2738_v3  ;;  %v2745_v12 = vsel %vm572_vm2, %v2687_v54, 0.0  ;;  %v2659_v44 = vld [vmem:[%s4600_s28] sm:$0x1] }
 0x20d   : > { %v2741_v57 = vsel %vm572_vm2, %v2685_v19, 0.0  ;;  %v3591_v13 = vadd.f32 %v2500_v56, %v1675_v52  ;;  %v3559_v31 = vpop.f32.mrb[30].mxu0  ;;  %v1678_v47 = vpop.f32.mrb[31].mxu1 }
 0x20e   : > { %v2639_v2 = vadd.f32 %v2638_v46, %v2637_v42  ;;  %v2584_v4 = vadd.f32 %v3590_v48, %v4626_v30  ;;  %v3592_v40 = vadd.f32 %v3559_v31, %v3423_v5  ;;  %v2503_v15 = vpop.f32.mrb[31].mxu0  ;;  %v2742_v35 = vadd.f32 %v2741_v57, %v2740_v24 }
 0x20f   : > { %v2582_v36 = vadd.f32 %v3591_v13, %v4626_v30  ;;  %v3593_v38 = vadd.f32 %v2503_v15, %v1678_v47 }
 0x210   : > { %2793 = vst.msk [vmem:[%s4631_s9 + $0xf0] sm:$0xff] %vm572_vm2, %v2584_v4  ;;  %v2641_v26 = vadd.f32 %v2640_v33, %v2639_v2  ;;  %v2585_v49 = vadd.f32 %v3592_v40, %v4626_v30  ;;  %v2744_v62 = vadd.f32 %v2743_v43, %v2742_v35  ;;  %v2690_v25 = vmul.f32 %v2584_v4, %v2584_v4 }
 0x211   : > { %v2642_v22 = vsel %vm572_vm2, %v2582_v36, 0.0  ;;  %v2688_v29 = vmul.f32 %v2582_v36, %v2582_v36  ;;  %2791 = vst.msk [vmem:[%s4631_s9 + $0xe0] sm:$0xff] %vm572_vm2, %v2582_v36  ;;  %v2583_v37 = vadd.f32 %v3593_v38, %v4626_v30  ;;  %v2646_v16 = vsel %vm572_vm2, %v2584_v4, 0.0 }
 0x212   : > { %v2643_v59 = vadd.f32 %v2642_v22, %v2641_v26  ;;  %2794 = vst.msk [vmem:[%s4631_s9 + $0xf8] sm:$0xff] %vm572_vm2, %v2585_v49  ;;  %v2746_v51 = vadd.f32 %v2745_v12, %v2744_v62  ;;  %v2691_v28 = vmul.f32 %v2585_v49, %v2585_v49  ;;  %v2648_v7 = vsel %vm572_vm2, %v2585_v49, 0.0 }
 0x213   : > { %v2747_v55 = vsel %vm572_vm2, %v2688_v29, 0.0  ;;  %v2644_v20 = vsel %vm572_vm2, %v2583_v37, 0.0  ;;  %v2689_v17 = vmul.f32 %v2583_v37, %v2583_v37  ;;  %2792 = vst.msk [vmem:[%s4631_s9 + $0xe8] sm:$0xff] %vm572_vm2, %v2583_v37  ;;  %v2751_v32 = vsel %vm572_vm2, %v2690_v25, 0.0 }
 0x214   : > { %v2645_v18 = vadd.f32 %v2644_v20, %v2643_v59  ;;  %v2748_v11 = vadd.f32 %v2747_v55, %v2746_v51  ;;  %v2753_v45 = vsel %vm572_vm2, %v2691_v28, 0.0 }
 0x215   : > { %v2749_v30 = vsel %vm572_vm2, %v2689_v17, 0.0 }
 0x216   : > { %v2647_v60 = vadd.f32 %v2646_v16, %v2645_v18  ;;  %v2750_v58 = vadd.f32 %v2749_v30, %v2748_v11 }
 0x218   : > { %v2649_v39 = vadd.f32 %v2648_v7, %v2647_v60  ;;  %v2752_v61 = vadd.f32 %v2751_v32, %v2750_v58 }
 0x21a   : > { %v2650_v8 = vrot.slane %v2649_v39, 4  ;;  %v2754_v63 = vadd.f32 %v2753_v45, %v2752_v61 }
 0x21c   : > { %v2651_v1 = vadd.f32 %v2650_v8, %v2649_v39  ;;  %v2755_v9 = vrot.slane %v2754_v63, 4 }
 0x21e   : > { %v2652_v10 = vrot.slane %v2651_v1, 2  ;;  %v2756_v53 = vadd.f32 %v2755_v9, %v2754_v63 }
 0x220   : > { %v2653_v0 = vadd.f32 %v2652_v10, %v2651_v1  ;;  %v2757_v27 = vrot.slane %v2756_v53, 2 }
 0x222   : > { %v2654_v14 = vrot.slane %v2653_v0, 1  ;;  %v2758_v50 = vadd.f32 %v2757_v27, %v2756_v53 }
 0x224   : > { %v2655_v6 = vadd.f32 %v2654_v14, %v2653_v0  ;;  %v2759_v3 = vrot.slane %v2758_v50, 1 }
 0x226   : > { %v2656_v23 = vadd.f32 %v2655_v6, %v2586_v34  ;;  %v2760_v19 = vadd.f32 %v2759_v3, %v2758_v50 }
 0x228   : > { %2658 = vst.msk [vmem:[%s4594_s25] sm:$0x1] %vm283_vm4, %v2656_v23  ;;  %v2761_v41 = vadd.f32 %v2760_v19, %v2659_v44 }
 0x22a   : > { %2762 = vst.msk [vmem:[%s4600_s28] sm:$0x1] %vm283_vm4, %v2761_v41 }
 0x22b PF: > { %s16_s20 = sadd.s32 1, %s3876_s20   ;;  %s4826_s18 = smov %s3872_s19 }
 0x22c   : > { %p13_p5 = scmp.ge.s32.totalorder %s16_s20, 4   ;;  %s4827_s19 = smov %s4829_s21 }
 0x22e   :  { %15 = sbr.rel (!%p13_p5) target bundleno = 2 (0x2), region = 98 }

</bundles_post_ra>
